<compile_context>
chip_gen: v6e
topology: v6e:2x2x1
jax: 0.10.0
libtpu: 0.0.40
codegen_flags: <defaults>
</compile_context>

<pallas_src>
import math
import functools

import jax
import jax.numpy as jnp
from jax import lax
from jax.experimental import pallas as pl
from jax.experimental.pallas import tpu as pltpu

NEG_INF = -1e30  # finite "-inf": safe under max/exp and the bf16 cast; note a
                 # fully-masked row would silently give garbage (never happens
                 # with a causal mask since every row sees at least itself).


def _default_exp_dtype():
    """bf16 exp halves EUP pressure on v6e/v7x; keep f32 on older chips."""
    try:
        kind = jax.devices()[0].device_kind.lower()
    except Exception:
        return jnp.float32
    return jnp.bfloat16 if ("v6" in kind or "v7" in kind) else jnp.float32


def _attn_kernel(qi_map_ref, ki_map_ref, last_map_ref,            # scalar prefetch (SMEM)
                 x_ref, wqkv_ref, bqkv_ref, wproj_ref, bproj_ref,  # inputs
                 o_ref,                                            # output
                 q_sc, k_sc, v_sc, m_sc, l_sc, acc_sc, y_sc,       # scratch
                 *, n_head, tq, tk, exp_dtype):
    T, C = x_ref.shape
    hd = C // n_head
    scale = 1.0 / math.sqrt(hd)

    s_id = pl.program_id(1)
    qi = qi_map_ref[s_id]
    ki = ki_map_ref[s_id]
    q_start = pl.multiple_of(qi * tq, tq)
    k_start = pl.multiple_of(ki * tk, tk)

    # ---- once per batch element: fused QKV projection, chunked over T,
    #      stored head-major (H, T, hd) in bf16 with the scale folded into Q --
    @pl.when(s_id == 0)
    def _qkv_projection():
        chunk = tq

        def project(c, carry):
            r0 = pl.multiple_of(c * chunk, chunk)
            xc = x_ref[pl.ds(r0, chunk), :]                              # (chunk, C) bf16
            qkv = jnp.dot(xc, wqkv_ref[...],
                          preferred_element_type=jnp.float32)
            qkv = qkv + bqkv_ref[...]                                    # (chunk, 3C) f32
            for h in range(n_head):
                q_sc[h, pl.ds(r0, chunk), :] = (
                    qkv[:, h * hd:(h + 1) * hd] * scale).astype(q_sc.dtype)
                k_sc[h, pl.ds(r0, chunk), :] = (
                    qkv[:, C + h * hd:C + (h + 1) * hd]).astype(k_sc.dtype)
                v_sc[h, pl.ds(r0, chunk), :] = (
                    qkv[:, 2 * C + h * hd:2 * C + (h + 1) * hd]).astype(v_sc.dtype)
            return carry

        lax.fori_loop(0, T // chunk, project, 0)

    # ---- once per q-tile: reset online-softmax state --------------------------
    @pl.when(ki == 0)
    def _init_state():
        m_sc[...] = jnp.full(m_sc.shape, NEG_INF, dtype=m_sc.dtype)
        l_sc[...] = jnp.zeros(l_sc.shape, dtype=l_sc.dtype)
        acc_sc[...] = jnp.zeros(acc_sc.shape, dtype=acc_sc.dtype)

    # ---- online-softmax update over all heads at once --------------------------
    def online_update(apply_mask):
        qh = q_sc[:, pl.ds(q_start, tq), :]                              # (H, TQ, hd) bf16, pre-scaled
        kh = k_sc[:, pl.ds(k_start, tk), :]                              # (H, TK, hd) bf16
        vh = v_sc[:, pl.ds(k_start, tk), :]                              # (H, TK, hd) bf16

        s = jnp.einsum('hqd,hkd->hqk', qh, kh,
                       preferred_element_type=jnp.float32)               # (H, TQ, TK) f32
        if apply_mask:  # only emitted for tiles straddling the diagonal
            rows = q_start + lax.broadcasted_iota(jnp.int32, (tq, tk), 0)
            cols = k_start + lax.broadcasted_iota(jnp.int32, (tq, tk), 1)
            s = jnp.where((rows >= cols)[None, :, :], s, NEG_INF)

        m_prev = m_sc[...]                                               # (H, TQ, 1)
        m_new = jnp.maximum(m_prev, jnp.max(s, axis=-1, keepdims=True))
        alpha = jnp.exp(m_prev - m_new)                                  # f32, tiny
        p = jnp.exp((s - m_new).astype(exp_dtype))                       # EUP; bf16 on v6e/v7x

        l_sc[...] = alpha * l_sc[...] + jnp.sum(
            p.astype(jnp.float32), axis=-1, keepdims=True)
        acc_sc[...] = alpha * acc_sc[...] + jnp.einsum(
            'hqk,hkd->hqd', p.astype(jnp.bfloat16), vh,
            preferred_element_type=jnp.float32)
        m_sc[...] = m_new

    needs_mask = (k_start + (tk - 1)) > q_start

    @pl.when(needs_mask)
    def _masked():
        online_update(True)

    @pl.when(jnp.logical_not(needs_mask))
    def _unmasked():
        online_update(False)

    # ---- last k-tile for this q-tile: normalize, re-pack heads, out-projection --
    @pl.when(last_map_ref[s_id] == 1)
    def _finalize():
        inv = pl.reciprocal(l_sc[...], approx=False)                     # exact; once per q-tile
        y = acc_sc[...] * inv                                            # (H, TQ, hd) f32
        for h in range(n_head):                                          # once per q-tile, not per k-step
            y_sc[:, h * hd:(h + 1) * hd] = y[h].astype(y_sc.dtype)
        out = jnp.dot(y_sc[...], wproj_ref[...],
                      preferred_element_type=jnp.float32)
        o_ref[...] = (out + bproj_ref[...]).astype(o_ref.dtype)


def causal_self_attention(x, w_attn, b_attn, w_proj, b_proj, n_head, *,
                          q_tile=None, k_tile=None, exp_dtype=None,
                          vmem_limit_bytes=None):
    """x: (B, T, C). w_attn: (C, 3C), b_attn: (1, 3C), w_proj: (C, C), b_proj: (1, C)."""
    B, T, C = x.shape
    assert C % n_head == 0
    hd = C // n_head

    tq = q_tile if q_tile is not None else min(T, 128)
    if k_tile is not None:
        tk = k_tile
    else:
        tk = tq
        for cand in (256, 512):  # bigger K-tile: better MXU fill, fewer steps
            if cand >= tq and cand <= T and T % cand == 0:
                tk = cand
                break
    assert T % tq == 0 and T % tk == 0, "T must be divisible by the q/k tiles"
    n_q = T // tq

    if exp_dtype is None:
        exp_dtype = _default_exp_dtype()

    # Triangular step list: only (qi, ki) tile pairs at/below the causal diagonal.
    qi_list, ki_list, last_list = [], [], []
    for qi in range(n_q):
        ki_last = ((qi + 1) * tq - 1) // tk
        for ki in range(ki_last + 1):
            qi_list.append(qi)
            ki_list.append(ki)
            last_list.append(1 if ki == ki_last else 0)
    n_steps = len(qi_list)
    qi_map = jnp.asarray(qi_list, dtype=jnp.int32)
    ki_map = jnp.asarray(ki_list, dtype=jnp.int32)
    last_map = jnp.asarray(last_list, dtype=jnp.int32)

    out_dtype = x.dtype

    # bf16 MXU operands (f32 accumulation in-kernel); biases stay f32 and are
    # added after accumulation.
    xb = x.astype(jnp.bfloat16)
    wqkv = w_attn.astype(jnp.bfloat16)
    wproj = w_proj.astype(jnp.bfloat16)
    bqkv = b_attn.reshape(1, 3 * C).astype(jnp.float32)
    bproj = b_proj.reshape(1, C).astype(jnp.float32)

    kernel = functools.partial(_attn_kernel, n_head=n_head, tq=tq, tk=tk,
                               exp_dtype=exp_dtype)
    return pl.pallas_call(
        kernel,
        out_shape=jax.ShapeDtypeStruct((B, T, C), out_dtype),
        grid_spec=pltpu.PrefetchScalarGridSpec(
            num_scalar_prefetch=3,
            grid=(B, n_steps),
            in_specs=[
                pl.BlockSpec((None, T, C), lambda b, s, qm, km, lm: (b, 0, 0)),
                pl.BlockSpec((C, 3 * C), lambda b, s, qm, km, lm: (0, 0)),
                pl.BlockSpec((1, 3 * C), lambda b, s, qm, km, lm: (0, 0)),
                pl.BlockSpec((C, C), lambda b, s, qm, km, lm: (0, 0)),
                pl.BlockSpec((1, C), lambda b, s, qm, km, lm: (0, 0)),
            ],
            out_specs=pl.BlockSpec((None, tq, C),
                                   lambda b, s, qm, km, lm: (b, qm[s], 0)),
            scratch_shapes=[
                pltpu.VMEM((n_head, T, hd), jnp.bfloat16),   # Q (pre-scaled), head-major
                pltpu.VMEM((n_head, T, hd), jnp.bfloat16),   # K, head-major
                pltpu.VMEM((n_head, T, hd), jnp.bfloat16),   # V, head-major
                pltpu.VMEM((n_head, tq, 1), jnp.float32),    # running max m
                pltpu.VMEM((n_head, tq, 1), jnp.float32),    # running sum l
                pltpu.VMEM((n_head, tq, hd), jnp.float32),   # attention accumulator
                pltpu.VMEM((tq, C), jnp.bfloat16),           # re-packed heads for out-proj
            ],
        ),
        compiler_params=pltpu.CompilerParams(
            dimension_semantics=("parallel", "arbitrary"),
            vmem_limit_bytes=vmem_limit_bytes),
    )(qi_map, ki_map, last_map, xb, wqkv, bqkv, wproj, bproj)


def reference(x, w_attn, b_attn, w_proj, b_proj, n_head):
    """Pure-JAX f32 reference mirroring the PyTorch module."""
    B, T, C = x.shape
    hd = C // n_head
    qkv = x @ w_attn + b_attn[0]
    q, k, v = jnp.split(qkv, 3, axis=-1)

    def heads(t):  # (B, T, C) -> (B, H, T, hd)
        return t.reshape(B, T, n_head, hd).transpose(0, 2, 1, 3)

    q, k, v = heads(q), heads(k), heads(v)
    s = jnp.einsum("bhqd,bhkd->bhqk", q, k) / math.sqrt(hd)
    mask = jnp.tril(jnp.ones((T, T), dtype=bool))
    s = jnp.where(mask[None, None], s, -jnp.inf)
    p = jax.nn.softmax(s, axis=-1)
    y = jnp.einsum("bhqk,bhkd->bhqd", p, v)
    y = y.transpose(0, 2, 1, 3).reshape(B, T, C)
    return y @ w_proj + b_proj[0]


if __name__ == "__main__":
    # config: N_EMBD=32, N_HEAD=4, B=2, T=8
    B, T, C, N_HEAD = 2, 8, 32, 4

    key = jax.random.PRNGKey(0)
    kx, kw1, kb1, kw2, kb2 = jax.random.split(key, 5)

    x = jax.random.normal(kx, (B, T, C), dtype=jnp.float32)
    # Deterministic "Linear" parameters (already transposed to (in, out)).
    w_attn = jax.random.normal(kw1, (C, 3 * C), dtype=jnp.float32) * 0.02
    b_attn = jax.random.normal(kb1, (1, 3 * C), dtype=jnp.float32) * 0.02
    w_proj = jax.random.normal(kw2, (C, C), dtype=jnp.float32) * 0.02
    b_proj = jax.random.normal(kb2, (1, C), dtype=jnp.float32) * 0.02

    out = causal_self_attention(x, w_attn, b_attn, w_proj, b_proj, N_HEAD)
    out = jax.block_until_ready(out)

    ref = reference(x, w_attn, b_attn, w_proj, b_proj, N_HEAD)
    assert out.shape == (B, T, C)
    err = jnp.max(jnp.abs(out - ref))
    # bf16 MXU operands (f32 accumulation) -> bf16-level tolerance vs f32 ref.
    assert jnp.allclose(out, ref, atol=5e-3, rtol=5e-2), f"max abs diff {err}"

    print("KERNEL_OK")
</pallas_src>

<mosaic_0001>
module attributes {stable_mosaic.version = 11 : i64} {
  func.func @_attn_kernel(%arg0: i32, %arg1: i32, %arg2: memref<1xi32, #tpu.memory_space<smem>>, %arg3: memref<1xi32, #tpu.memory_space<smem>>, %arg4: memref<1xi32, #tpu.memory_space<smem>>, %arg5: memref<1x8x32xbf16, #tpu.memory_space<vmem>>, %arg6: memref<32x96xbf16, #tpu.memory_space<vmem>>, %arg7: memref<1x96xf32, #tpu.memory_space<vmem>>, %arg8: memref<32x32xbf16, #tpu.memory_space<vmem>>, %arg9: memref<1x32xf32, #tpu.memory_space<vmem>>, %arg10: memref<1x8x32xf32, #tpu.memory_space<vmem>>, %arg11: memref<4x8x8xbf16, #tpu.memory_space<vmem>>, %arg12: memref<4x8x8xbf16, #tpu.memory_space<vmem>>, %arg13: memref<4x8x8xbf16, #tpu.memory_space<vmem>>, %arg14: memref<4x8x1xf32, #tpu.memory_space<vmem>>, %arg15: memref<4x8x1xf32, #tpu.memory_space<vmem>>, %arg16: memref<4x8x8xf32, #tpu.memory_space<vmem>>, %arg17: memref<8x32xbf16, #tpu.memory_space<vmem>>) attributes {dimension_semantics = [#tpu.dimension_semantics<parallel>, #tpu.dimension_semantics<arbitrary>], iteration_bounds = array<i64: 2, 1>, scalar_prefetch = 3 : i64, scratch_operands = 7 : i64, tpu.core_type = #tpu.core_type<tc>, window_params = [{transform_indices = @transform_0, window_bounds = array<i64: 1, 8, 32>}, {pipeline_mode = #tpu.pipeline_mode<synchronous>, transform_indices = @transform_1, window_bounds = array<i64: 32, 96>}, {pipeline_mode = #tpu.pipeline_mode<synchronous>, transform_indices = @transform_2, window_bounds = array<i64: 1, 96>}, {pipeline_mode = #tpu.pipeline_mode<synchronous>, transform_indices = @transform_3, window_bounds = array<i64: 32, 32>}, {pipeline_mode = #tpu.pipeline_mode<synchronous>, transform_indices = @transform_4, window_bounds = array<i64: 1, 32>}, {transform_indices = @transform_5, window_bounds = array<i64: 1, 8, 32>}]} {
    %0 = arith.index_cast %arg1 : i32 to index
    %1 = memref.load %arg2[%0] : memref<1xi32, #tpu.memory_space<smem>>
    %2 = arith.index_cast %arg1 : i32 to index
    %3 = memref.load %arg3[%2] : memref<1xi32, #tpu.memory_space<smem>>
    %c8_i32 = arith.constant 8 : i32
    %4 = arith.muli %1, %c8_i32 : i32
    %5 = tpu.assume_multiple %4, 8 : i32
    %c8_i32_0 = arith.constant 8 : i32
    %6 = arith.muli %3, %c8_i32_0 : i32
    %7 = tpu.assume_multiple %6, 8 : i32
    %c0_i32 = arith.constant 0 : i32
    %8 = arith.cmpi eq, %arg1, %c0_i32 : i32
    %9 = arith.extui %8 : i1 to i32
    %c0_i32_1 = arith.constant 0 : i32
    %10 = arith.cmpi ne, %9, %c0_i32_1 : i32
    scf.if %10 {
      %c0_i32_7 = arith.constant 0 : i32
      %c8_i32_8 = arith.constant 8 : i32
      %26 = arith.muli %c0_i32_7, %c8_i32_8 : i32
      %27 = tpu.assume_multiple %26, 8 : i32
      %c0 = arith.constant 0 : index
      %28 = arith.index_cast %27 : i32 to index
      %c0_9 = arith.constant 0 : index
      %29 = vector.load %arg5[%c0, %28, %c0_9] : memref<1x8x32xbf16, #tpu.memory_space<vmem>>, vector<1x8x32xbf16>
      %30 = vector.shape_cast %29 : vector<1x8x32xbf16> to vector<8x32xbf16>
      %c0_10 = arith.constant 0 : index
      %c0_11 = arith.constant 0 : index
      %31 = vector.load %arg6[%c0_10, %c0_11] : memref<32x96xbf16, #tpu.memory_space<vmem>>, vector<32x96xbf16>
      %cst = arith.constant dense<0.000000e+00> : vector<8x96xf32>
      %32 = tpu.matmul %30, %31, %cst {dimension_numbers = #tpu.dot_dimension_numbers<[1], [0], [0], [1], [0, 0, 1, 1], [], []>} : vector<8x32xbf16>, vector<32x96xbf16>, vector<8x96xf32> -> vector<8x96xf32>
      %c0_12 = arith.constant 0 : index
      %c0_13 = arith.constant 0 : index
      %33 = vector.load %arg7[%c0_12, %c0_13] : memref<1x96xf32, #tpu.memory_space<vmem>>, vector<1x96xf32>
      %34 = vector.broadcast %33 : vector<1x96xf32> to vector<8x96xf32>
      %35 = arith.addf %32, %34 : vector<8x96xf32>
      %36 = vector.extract_strided_slice %35 {offsets = [0, 0], sizes = [8, 8], strides = [1, 1]} : vector<8x96xf32> to vector<8x8xf32>
      %cst_14 = arith.constant 0.353553385 : f32
      %37 = vector.broadcast %cst_14 : f32 to vector<8x8xf32>
      %38 = arith.mulf %36, %37 : vector<8x8xf32>
      %39 = arith.truncf %38 : vector<8x8xf32> to vector<8x8xbf16>
      %c0_15 = arith.constant 0 : index
      %40 = arith.index_cast %27 : i32 to index
      %c0_16 = arith.constant 0 : index
      %41 = vector.load %arg11[%c0_15, %40, %c0_16] : memref<4x8x8xbf16, #tpu.memory_space<vmem>>, vector<1x8x8xbf16>
      %42 = vector.shape_cast %41 : vector<1x8x8xbf16> to vector<8x8xbf16>
      %43 = vector.shape_cast %39 : vector<8x8xbf16> to vector<1x8x8xbf16>
      tpu.vector_store %arg11[%c0_15, %40, %c0_16], %43 {strides = array<i32>} : memref<4x8x8xbf16, #tpu.memory_space<vmem>>, vector<1x8x8xbf16>,
      %44 = vector.extract_strided_slice %35 {offsets = [0, 32], sizes = [8, 8], strides = [1, 1]} : vector<8x96xf32> to vector<8x8xf32>
      %45 = arith.truncf %44 : vector<8x8xf32> to vector<8x8xbf16>
      %c0_17 = arith.constant 0 : index
      %46 = arith.index_cast %27 : i32 to index
      %c0_18 = arith.constant 0 : index
      %47 = vector.load %arg12[%c0_17, %46, %c0_18] : memref<4x8x8xbf16, #tpu.memory_space<vmem>>, vector<1x8x8xbf16>
      %48 = vector.shape_cast %47 : vector<1x8x8xbf16> to vector<8x8xbf16>
      %49 = vector.shape_cast %45 : vector<8x8xbf16> to vector<1x8x8xbf16>
      tpu.vector_store %arg12[%c0_17, %46, %c0_18], %49 {strides = array<i32>} : memref<4x8x8xbf16, #tpu.memory_space<vmem>>, vector<1x8x8xbf16>,
      %50 = vector.extract_strided_slice %35 {offsets = [0, 64], sizes = [8, 8], strides = [1, 1]} : vector<8x96xf32> to vector<8x8xf32>
      %51 = arith.truncf %50 : vector<8x8xf32> to vector<8x8xbf16>
      %c0_19 = arith.constant 0 : index
      %52 = arith.index_cast %27 : i32 to index
      %c0_20 = arith.constant 0 : index
      %53 = vector.load %arg13[%c0_19, %52, %c0_20] : memref<4x8x8xbf16, #tpu.memory_space<vmem>>, vector<1x8x8xbf16>
      %54 = vector.shape_cast %53 : vector<1x8x8xbf16> to vector<8x8xbf16>
      %55 = vector.shape_cast %51 : vector<8x8xbf16> to vector<1x8x8xbf16>
      tpu.vector_store %arg13[%c0_19, %52, %c0_20], %55 {strides = array<i32>} : memref<4x8x8xbf16, #tpu.memory_space<vmem>>, vector<1x8x8xbf16>,
      %56 = vector.extract_strided_slice %35 {offsets = [0, 8], sizes = [8, 8], strides = [1, 1]} : vector<8x96xf32> to vector<8x8xf32>
      %cst_21 = arith.constant 0.353553385 : f32
      %57 = vector.broadcast %cst_21 : f32 to vector<8x8xf32>
      %58 = arith.mulf %56, %57 : vector<8x8xf32>
      %59 = arith.truncf %58 : vector<8x8xf32> to vector<8x8xbf16>
      %c1 = arith.constant 1 : index
      %60 = arith.index_cast %27 : i32 to index
      %c0_22 = arith.constant 0 : index
      %61 = vector.load %arg11[%c1, %60, %c0_22] : memref<4x8x8xbf16, #tpu.memory_space<vmem>>, vector<1x8x8xbf16>
      %62 = vector.shape_cast %61 : vector<1x8x8xbf16> to vector<8x8xbf16>
      %63 = vector.shape_cast %59 : vector<8x8xbf16> to vector<1x8x8xbf16>
      tpu.vector_store %arg11[%c1, %60, %c0_22], %63 {strides = array<i32>} : memref<4x8x8xbf16, #tpu.memory_space<vmem>>, vector<1x8x8xbf16>,
      %64 = vector.extract_strided_slice %35 {offsets = [0, 40], sizes = [8, 8], strides = [1, 1]} : vector<8x96xf32> to vector<8x8xf32>
      %65 = arith.truncf %64 : vector<8x8xf32> to vector<8x8xbf16>
      %c1_23 = arith.constant 1 : index
      %66 = arith.index_cast %27 : i32 to index
      %c0_24 = arith.constant 0 : index
      %67 = vector.load %arg12[%c1_23, %66, %c0_24] : memref<4x8x8xbf16, #tpu.memory_space<vmem>>, vector<1x8x8xbf16>
      %68 = vector.shape_cast %67 : vector<1x8x8xbf16> to vector<8x8xbf16>
      %69 = vector.shape_cast %65 : vector<8x8xbf16> to vector<1x8x8xbf16>
      tpu.vector_store %arg12[%c1_23, %66, %c0_24], %69 {strides = array<i32>} : memref<4x8x8xbf16, #tpu.memory_space<vmem>>, vector<1x8x8xbf16>,
      %70 = vector.extract_strided_slice %35 {offsets = [0, 72], sizes = [8, 8], strides = [1, 1]} : vector<8x96xf32> to vector<8x8xf32>
      %71 = arith.truncf %70 : vector<8x8xf32> to vector<8x8xbf16>
      %c1_25 = arith.constant 1 : index
      %72 = arith.index_cast %27 : i32 to index
      %c0_26 = arith.constant 0 : index
      %73 = vector.load %arg13[%c1_25, %72, %c0_26] : memref<4x8x8xbf16, #tpu.memory_space<vmem>>, vector<1x8x8xbf16>
      %74 = vector.shape_cast %73 : vector<1x8x8xbf16> to vector<8x8xbf16>
      %75 = vector.shape_cast %71 : vector<8x8xbf16> to vector<1x8x8xbf16>
      tpu.vector_store %arg13[%c1_25, %72, %c0_26], %75 {strides = array<i32>} : memref<4x8x8xbf16, #tpu.memory_space<vmem>>, vector<1x8x8xbf16>,
      %76 = vector.extract_strided_slice %35 {offsets = [0, 16], sizes = [8, 8], strides = [1, 1]} : vector<8x96xf32> to vector<8x8xf32>
      %cst_27 = arith.constant 0.353553385 : f32
      %77 = vector.broadcast %cst_27 : f32 to vector<8x8xf32>
      %78 = arith.mulf %76, %77 : vector<8x8xf32>
      %79 = arith.truncf %78 : vector<8x8xf32> to vector<8x8xbf16>
      %c2 = arith.constant 2 : index
      %80 = arith.index_cast %27 : i32 to index
      %c0_28 = arith.constant 0 : index
      %81 = vector.load %arg11[%c2, %80, %c0_28] : memref<4x8x8xbf16, #tpu.memory_space<vmem>>, vector<1x8x8xbf16>
      %82 = vector.shape_cast %81 : vector<1x8x8xbf16> to vector<8x8xbf16>
      %83 = vector.shape_cast %79 : vector<8x8xbf16> to vector<1x8x8xbf16>
      tpu.vector_store %arg11[%c2, %80, %c0_28], %83 {strides = array<i32>} : memref<4x8x8xbf16, #tpu.memory_space<vmem>>, vector<1x8x8xbf16>,
      %84 = vector.extract_strided_slice %35 {offsets = [0, 48], sizes = [8, 8], strides = [1, 1]} : vector<8x96xf32> to vector<8x8xf32>
      %85 = arith.truncf %84 : vector<8x8xf32> to vector<8x8xbf16>
      %c2_29 = arith.constant 2 : index
      %86 = arith.index_cast %27 : i32 to index
      %c0_30 = arith.constant 0 : index
      %87 = vector.load %arg12[%c2_29, %86, %c0_30] : memref<4x8x8xbf16, #tpu.memory_space<vmem>>, vector<1x8x8xbf16>
      %88 = vector.shape_cast %87 : vector<1x8x8xbf16> to vector<8x8xbf16>
      %89 = vector.shape_cast %85 : vector<8x8xbf16> to vector<1x8x8xbf16>
      tpu.vector_store %arg12[%c2_29, %86, %c0_30], %89 {strides = array<i32>} : memref<4x8x8xbf16, #tpu.memory_space<vmem>>, vector<1x8x8xbf16>,
      %90 = vector.extract_strided_slice %35 {offsets = [0, 80], sizes = [8, 8], strides = [1, 1]} : vector<8x96xf32> to vector<8x8xf32>
      %91 = arith.truncf %90 : vector<8x8xf32> to vector<8x8xbf16>
      %c2_31 = arith.constant 2 : index
      %92 = arith.index_cast %27 : i32 to index
      %c0_32 = arith.constant 0 : index
      %93 = vector.load %arg13[%c2_31, %92, %c0_32] : memref<4x8x8xbf16, #tpu.memory_space<vmem>>, vector<1x8x8xbf16>
      %94 = vector.shape_cast %93 : vector<1x8x8xbf16> to vector<8x8xbf16>
      %95 = vector.shape_cast %91 : vector<8x8xbf16> to vector<1x8x8xbf16>
      tpu.vector_store %arg13[%c2_31, %92, %c0_32], %95 {strides = array<i32>} : memref<4x8x8xbf16, #tpu.memory_space<vmem>>, vector<1x8x8xbf16>,
      %96 = vector.extract_strided_slice %35 {offsets = [0, 24], sizes = [8, 8], strides = [1, 1]} : vector<8x96xf32> to vector<8x8xf32>
      %cst_33 = arith.constant 0.353553385 : f32
      %97 = vector.broadcast %cst_33 : f32 to vector<8x8xf32>
      %98 = arith.mulf %96, %97 : vector<8x8xf32>
      %99 = arith.truncf %98 : vector<8x8xf32> to vector<8x8xbf16>
      %c3 = arith.constant 3 : index
      %100 = arith.index_cast %27 : i32 to index
      %c0_34 = arith.constant 0 : index
      %101 = vector.load %arg11[%c3, %100, %c0_34] : memref<4x8x8xbf16, #tpu.memory_space<vmem>>, vector<1x8x8xbf16>
      %102 = vector.shape_cast %101 : vector<1x8x8xbf16> to vector<8x8xbf16>
      %103 = vector.shape_cast %99 : vector<8x8xbf16> to vector<1x8x8xbf16>
      tpu.vector_store %arg11[%c3, %100, %c0_34], %103 {strides = array<i32>} : memref<4x8x8xbf16, #tpu.memory_space<vmem>>, vector<1x8x8xbf16>,
      %104 = vector.extract_strided_slice %35 {offsets = [0, 56], sizes = [8, 8], strides = [1, 1]} : vector<8x96xf32> to vector<8x8xf32>
      %105 = arith.truncf %104 : vector<8x8xf32> to vector<8x8xbf16>
      %c3_35 = arith.constant 3 : index
      %106 = arith.index_cast %27 : i32 to index
      %c0_36 = arith.constant 0 : index
      %107 = vector.load %arg12[%c3_35, %106, %c0_36] : memref<4x8x8xbf16, #tpu.memory_space<vmem>>, vector<1x8x8xbf16>
      %108 = vector.shape_cast %107 : vector<1x8x8xbf16> to vector<8x8xbf16>
      %109 = vector.shape_cast %105 : vector<8x8xbf16> to vector<1x8x8xbf16>
      tpu.vector_store %arg12[%c3_35, %106, %c0_36], %109 {strides = array<i32>} : memref<4x8x8xbf16, #tpu.memory_space<vmem>>, vector<1x8x8xbf16>,
      %110 = vector.extract_strided_slice %35 {offsets = [0, 88], sizes = [8, 8], strides = [1, 1]} : vector<8x96xf32> to vector<8x8xf32>
      %111 = arith.truncf %110 : vector<8x8xf32> to vector<8x8xbf16>
      %c3_37 = arith.constant 3 : index
      %112 = arith.index_cast %27 : i32 to index
      %c0_38 = arith.constant 0 : index
      %113 = vector.load %arg13[%c3_37, %112, %c0_38] : memref<4x8x8xbf16, #tpu.memory_space<vmem>>, vector<1x8x8xbf16>
      %114 = vector.shape_cast %113 : vector<1x8x8xbf16> to vector<8x8xbf16>
      %115 = vector.shape_cast %111 : vector<8x8xbf16> to vector<1x8x8xbf16>
      tpu.vector_store %arg13[%c3_37, %112, %c0_38], %115 {strides = array<i32>} : memref<4x8x8xbf16, #tpu.memory_space<vmem>>, vector<1x8x8xbf16>,
      %c1_i32_39 = arith.constant 1 : i32
    } else {
    }
    %c0_i32_2 = arith.constant 0 : i32
    %11 = arith.cmpi eq, %3, %c0_i32_2 : i32
    %12 = arith.extui %11 : i1 to i32
    %c0_i32_3 = arith.constant 0 : i32
    %13 = arith.cmpi ne, %12, %c0_i32_3 : i32
    scf.if %13 {
      %cst = arith.constant -1.000000e+30 : f32
      %26 = vector.broadcast %cst : f32 to vector<4x8x1xf32>
      %c0 = arith.constant 0 : index
      %c0_7 = arith.constant 0 : index
      %c0_8 = arith.constant 0 : index
      %27 = vector.load %arg14[%c0, %c0_7, %c0_8] : memref<4x8x1xf32, #tpu.memory_space<vmem>>, vector<4x8x1xf32>
      tpu.vector_store %arg14[%c0, %c0_7, %c0_8], %26 {strides = array<i32>} : memref<4x8x1xf32, #tpu.memory_space<vmem>>, vector<4x8x1xf32>,
      %cst_9 = arith.constant 0.000000e+00 : f32
      %28 = vector.broadcast %cst_9 : f32 to vector<4x8x1xf32>
      %c0_10 = arith.constant 0 : index
      %c0_11 = arith.constant 0 : index
      %c0_12 = arith.constant 0 : index
      %29 = vector.load %arg15[%c0_10, %c0_11, %c0_12] : memref<4x8x1xf32, #tpu.memory_space<vmem>>, vector<4x8x1xf32>
      tpu.vector_store %arg15[%c0_10, %c0_11, %c0_12], %28 {strides = array<i32>} : memref<4x8x1xf32, #tpu.memory_space<vmem>>, vector<4x8x1xf32>,
      %cst_13 = arith.constant 0.000000e+00 : f32
      %30 = vector.broadcast %cst_13 : f32 to vector<4x8x8xf32>
      %c0_14 = arith.constant 0 : index
      %c0_15 = arith.constant 0 : index
      %c0_16 = arith.constant 0 : index
      %31 = vector.load %arg16[%c0_14, %c0_15, %c0_16] : memref<4x8x8xf32, #tpu.memory_space<vmem>>, vector<4x8x8xf32>
      tpu.vector_store %arg16[%c0_14, %c0_15, %c0_16], %30 {strides = array<i32>} : memref<4x8x8xf32, #tpu.memory_space<vmem>>, vector<4x8x8xf32>,
    } else {
    }
    %c7_i32 = arith.constant 7 : i32
    %14 = arith.addi %7, %c7_i32 : i32
    %15 = arith.cmpi sgt, %14, %5 : i32
    %16 = arith.extui %15 : i1 to i32
    %c0_i32_4 = arith.constant 0 : i32
    %17 = arith.cmpi ne, %16, %c0_i32_4 : i32
    scf.if %17 {
      %c0 = arith.constant 0 : index
      %26 = arith.index_cast %5 : i32 to index
      %c0_7 = arith.constant 0 : index
      %27 = vector.load %arg11[%c0, %26, %c0_7] : memref<4x8x8xbf16, #tpu.memory_space<vmem>>, vector<4x8x8xbf16>
      %c0_8 = arith.constant 0 : index
      %28 = arith.index_cast %7 : i32 to index
      %c0_9 = arith.constant 0 : index
      %29 = vector.load %arg12[%c0_8, %28, %c0_9] : memref<4x8x8xbf16, #tpu.memory_space<vmem>>, vector<4x8x8xbf16>
      %c0_10 = arith.constant 0 : index
      %30 = arith.index_cast %7 : i32 to index
      %c0_11 = arith.constant 0 : index
      %31 = vector.load %arg13[%c0_10, %30, %c0_11] : memref<4x8x8xbf16, #tpu.memory_space<vmem>>, vector<4x8x8xbf16>
      "tpu.trace_start"() <{level = 10 : i32, message = "hqd,hkd->hqk"}> : () -> ()
      %cst = arith.constant dense<0.000000e+00> : vector<4x8x8xf32>
      %32 = tpu.matmul %27, %29, %cst {dimension_numbers = #tpu.dot_dimension_numbers<[2], [2], [1], [1], [0, 0, 0, 1, 1, 1], [0], [0]>} : vector<4x8x8xbf16>, vector<4x8x8xbf16>, vector<4x8x8xf32> -> vector<4x8x8xf32>
      "tpu.trace_stop"() : () -> ()
      %33 = tpu.iota {dimensions = array<i32: 0>} : vector<8x8xi32>
      %34 = vector.broadcast %5 : i32 to vector<8x8xi32>
      %35 = arith.addi %34, %33 : vector<8x8xi32>
      %36 = tpu.iota {dimensions = array<i32: 1>} : vector<8x8xi32>
      %37 = vector.broadcast %7 : i32 to vector<8x8xi32>
      %38 = arith.addi %37, %36 : vector<8x8xi32>
      %39 = arith.cmpi sge, %35, %38 : vector<8x8xi32>
      %40 = vector.shape_cast %39 : vector<8x8xi1> to vector<1x8x8xi1>
      %cst_12 = arith.constant -1.000000e+30 : f32
      %41 = vector.shape_cast %40 : vector<1x8x8xi1> to vector<1x8x8xi1>
      %42 = vector.broadcast %41 : vector<1x8x8xi1> to vector<4x8x8xi1>
      %43 = vector.broadcast %cst_12 : f32 to vector<4x8x8xf32>
      %44 = arith.select %42, %32, %43 : vector<4x8x8xi1>, vector<4x8x8xf32>
      %c0_13 = arith.constant 0 : index
      %c0_14 = arith.constant 0 : index
      %c0_15 = arith.constant 0 : index
      %45 = vector.load %arg14[%c0_13, %c0_14, %c0_15] : memref<4x8x1xf32, #tpu.memory_space<vmem>>, vector<4x8x1xf32>
      %cst_16 = arith.constant dense<0xFF800000> : vector<4x8xf32>
      %46 = vector.multi_reduction <maximumf>, %44, %cst_16 [2] : vector<4x8x8xf32> to vector<4x8xf32>
      %47 = vector.shape_cast %46 : vector<4x8xf32> to vector<4x8x1xf32>
      %48 = arith.maximumf %45, %47 : vector<4x8x1xf32>
      %49 = arith.subf %45, %48 : vector<4x8x1xf32>
      %50 = math.exp %49 : vector<4x8x1xf32>
      %51 = vector.broadcast %48 : vector<4x8x1xf32> to vector<4x8x8xf32>
      %52 = arith.subf %44, %51 : vector<4x8x8xf32>
      %53 = math.exp %52 : vector<4x8x8xf32>
      %c0_17 = arith.constant 0 : index
      %c0_18 = arith.constant 0 : index
      %c0_19 = arith.constant 0 : index
      %54 = vector.load %arg15[%c0_17, %c0_18, %c0_19] : memref<4x8x1xf32, #tpu.memory_space<vmem>>, vector<4x8x1xf32>
      %55 = arith.mulf %50, %54 : vector<4x8x1xf32>
      %cst_20 = arith.constant dense<0.000000e+00> : vector<4x8xf32>
      %56 = vector.multi_reduction <add>, %53, %cst_20 [2] : vector<4x8x8xf32> to vector<4x8xf32>
      %57 = vector.shape_cast %56 : vector<4x8xf32> to vector<4x8x1xf32>
      %58 = arith.addf %55, %57 : vector<4x8x1xf32>
      %c0_21 = arith.constant 0 : index
      %c0_22 = arith.constant 0 : index
      %c0_23 = arith.constant 0 : index
      %59 = vector.load %arg15[%c0_21, %c0_22, %c0_23] : memref<4x8x1xf32, #tpu.memory_space<vmem>>, vector<4x8x1xf32>
      tpu.vector_store %arg15[%c0_21, %c0_22, %c0_23], %58 {strides = array<i32>} : memref<4x8x1xf32, #tpu.memory_space<vmem>>, vector<4x8x1xf32>,
      %c0_24 = arith.constant 0 : index
      %c0_25 = arith.constant 0 : index
      %c0_26 = arith.constant 0 : index
      %60 = vector.load %arg16[%c0_24, %c0_25, %c0_26] : memref<4x8x8xf32, #tpu.memory_space<vmem>>, vector<4x8x8xf32>
      %61 = vector.broadcast %50 : vector<4x8x1xf32> to vector<4x8x8xf32>
      %62 = arith.mulf %61, %60 : vector<4x8x8xf32>
      %63 = arith.truncf %53 : vector<4x8x8xf32> to vector<4x8x8xbf16>
      "tpu.trace_start"() <{level = 10 : i32, message = "hqk,hkd->hqd"}> : () -> ()
      %cst_27 = arith.constant dense<0.000000e+00> : vector<4x8x8xf32>
      %64 = tpu.matmul %63, %31, %cst_27 {dimension_numbers = #tpu.dot_dimension_numbers<[2], [1], [1], [2], [0, 0, 0, 1, 1, 2], [0], [0]>} : vector<4x8x8xbf16>, vector<4x8x8xbf16>, vector<4x8x8xf32> -> vector<4x8x8xf32>
      "tpu.trace_stop"() : () -> ()
      %65 = arith.addf %62, %64 : vector<4x8x8xf32>
      %c0_28 = arith.constant 0 : index
      %c0_29 = arith.constant 0 : index
      %c0_30 = arith.constant 0 : index
      %66 = vector.load %arg16[%c0_28, %c0_29, %c0_30] : memref<4x8x8xf32, #tpu.memory_space<vmem>>, vector<4x8x8xf32>
      tpu.vector_store %arg16[%c0_28, %c0_29, %c0_30], %65 {strides = array<i32>} : memref<4x8x8xf32, #tpu.memory_space<vmem>>, vector<4x8x8xf32>,
      %c0_31 = arith.constant 0 : index
      %c0_32 = arith.constant 0 : index
      %c0_33 = arith.constant 0 : index
      %67 = vector.load %arg14[%c0_31, %c0_32, %c0_33] : memref<4x8x1xf32, #tpu.memory_space<vmem>>, vector<4x8x1xf32>
      tpu.vector_store %arg14[%c0_31, %c0_32, %c0_33], %48 {strides = array<i32>} : memref<4x8x1xf32, #tpu.memory_space<vmem>>, vector<4x8x1xf32>,
    } else {
    }
    %true = arith.constant true
    %18 = arith.xori %15, %true : i1
    %19 = arith.extui %18 : i1 to i32
    %c0_i32_5 = arith.constant 0 : i32
    %20 = arith.cmpi ne, %19, %c0_i32_5 : i32
    scf.if %20 {
      %c0 = arith.constant 0 : index
      %26 = arith.index_cast %5 : i32 to index
      %c0_7 = arith.constant 0 : index
      %27 = vector.load %arg11[%c0, %26, %c0_7] : memref<4x8x8xbf16, #tpu.memory_space<vmem>>, vector<4x8x8xbf16>
      %c0_8 = arith.constant 0 : index
      %28 = arith.index_cast %7 : i32 to index
      %c0_9 = arith.constant 0 : index
      %29 = vector.load %arg12[%c0_8, %28, %c0_9] : memref<4x8x8xbf16, #tpu.memory_space<vmem>>, vector<4x8x8xbf16>
      %c0_10 = arith.constant 0 : index
      %30 = arith.index_cast %7 : i32 to index
      %c0_11 = arith.constant 0 : index
      %31 = vector.load %arg13[%c0_10, %30, %c0_11] : memref<4x8x8xbf16, #tpu.memory_space<vmem>>, vector<4x8x8xbf16>
      "tpu.trace_start"() <{level = 10 : i32, message = "hqd,hkd->hqk"}> : () -> ()
      %cst = arith.constant dense<0.000000e+00> : vector<4x8x8xf32>
      %32 = tpu.matmul %27, %29, %cst {dimension_numbers = #tpu.dot_dimension_numbers<[2], [2], [1], [1], [0, 0, 0, 1, 1, 1], [0], [0]>} : vector<4x8x8xbf16>, vector<4x8x8xbf16>, vector<4x8x8xf32> -> vector<4x8x8xf32>
      "tpu.trace_stop"() : () -> ()
      %c0_12 = arith.constant 0 : index
      %c0_13 = arith.constant 0 : index
      %c0_14 = arith.constant 0 : index
      %33 = vector.load %arg14[%c0_12, %c0_13, %c0_14] : memref<4x8x1xf32, #tpu.memory_space<vmem>>, vector<4x8x1xf32>
      %cst_15 = arith.constant dense<0xFF800000> : vector<4x8xf32>
      %34 = vector.multi_reduction <maximumf>, %32, %cst_15 [2] : vector<4x8x8xf32> to vector<4x8xf32>
      %35 = vector.shape_cast %34 : vector<4x8xf32> to vector<4x8x1xf32>
      %36 = arith.maximumf %33, %35 : vector<4x8x1xf32>
      %37 = arith.subf %33, %36 : vector<4x8x1xf32>
      %38 = math.exp %37 : vector<4x8x1xf32>
      %39 = vector.broadcast %36 : vector<4x8x1xf32> to vector<4x8x8xf32>
      %40 = arith.subf %32, %39 : vector<4x8x8xf32>
      %41 = math.exp %40 : vector<4x8x8xf32>
      %c0_16 = arith.constant 0 : index
      %c0_17 = arith.constant 0 : index
      %c0_18 = arith.constant 0 : index
      %42 = vector.load %arg15[%c0_16, %c0_17, %c0_18] : memref<4x8x1xf32, #tpu.memory_space<vmem>>, vector<4x8x1xf32>
      %43 = arith.mulf %38, %42 : vector<4x8x1xf32>
      %cst_19 = arith.constant dense<0.000000e+00> : vector<4x8xf32>
      %44 = vector.multi_reduction <add>, %41, %cst_19 [2] : vector<4x8x8xf32> to vector<4x8xf32>
      %45 = vector.shape_cast %44 : vector<4x8xf32> to vector<4x8x1xf32>
      %46 = arith.addf %43, %45 : vector<4x8x1xf32>
      %c0_20 = arith.constant 0 : index
      %c0_21 = arith.constant 0 : index
      %c0_22 = arith.constant 0 : index
      %47 = vector.load %arg15[%c0_20, %c0_21, %c0_22] : memref<4x8x1xf32, #tpu.memory_space<vmem>>, vector<4x8x1xf32>
      tpu.vector_store %arg15[%c0_20, %c0_21, %c0_22], %46 {strides = array<i32>} : memref<4x8x1xf32, #tpu.memory_space<vmem>>, vector<4x8x1xf32>,
      %c0_23 = arith.constant 0 : index
      %c0_24 = arith.constant 0 : index
      %c0_25 = arith.constant 0 : index
      %48 = vector.load %arg16[%c0_23, %c0_24, %c0_25] : memref<4x8x8xf32, #tpu.memory_space<vmem>>, vector<4x8x8xf32>
      %49 = vector.broadcast %38 : vector<4x8x1xf32> to vector<4x8x8xf32>
      %50 = arith.mulf %49, %48 : vector<4x8x8xf32>
      %51 = arith.truncf %41 : vector<4x8x8xf32> to vector<4x8x8xbf16>
      "tpu.trace_start"() <{level = 10 : i32, message = "hqk,hkd->hqd"}> : () -> ()
      %cst_26 = arith.constant dense<0.000000e+00> : vector<4x8x8xf32>
      %52 = tpu.matmul %51, %31, %cst_26 {dimension_numbers = #tpu.dot_dimension_numbers<[2], [1], [1], [2], [0, 0, 0, 1, 1, 2], [0], [0]>} : vector<4x8x8xbf16>, vector<4x8x8xbf16>, vector<4x8x8xf32> -> vector<4x8x8xf32>
      "tpu.trace_stop"() : () -> ()
      %53 = arith.addf %50, %52 : vector<4x8x8xf32>
      %c0_27 = arith.constant 0 : index
      %c0_28 = arith.constant 0 : index
      %c0_29 = arith.constant 0 : index
      %54 = vector.load %arg16[%c0_27, %c0_28, %c0_29] : memref<4x8x8xf32, #tpu.memory_space<vmem>>, vector<4x8x8xf32>
      tpu.vector_store %arg16[%c0_27, %c0_28, %c0_29], %53 {strides = array<i32>} : memref<4x8x8xf32, #tpu.memory_space<vmem>>, vector<4x8x8xf32>,
      %c0_30 = arith.constant 0 : index
      %c0_31 = arith.constant 0 : index
      %c0_32 = arith.constant 0 : index
      %55 = vector.load %arg14[%c0_30, %c0_31, %c0_32] : memref<4x8x1xf32, #tpu.memory_space<vmem>>, vector<4x8x1xf32>
      tpu.vector_store %arg14[%c0_30, %c0_31, %c0_32], %36 {strides = array<i32>} : memref<4x8x1xf32, #tpu.memory_space<vmem>>, vector<4x8x1xf32>,
    } else {
    }
    %21 = arith.index_cast %arg1 : i32 to index
    %22 = memref.load %arg4[%21] : memref<1xi32, #tpu.memory_space<smem>>
    %c1_i32 = arith.constant 1 : i32
    %23 = arith.cmpi eq, %22, %c1_i32 : i32
    %24 = arith.extui %23 : i1 to i32
    %c0_i32_6 = arith.constant 0 : i32
    %25 = arith.cmpi ne, %24, %c0_i32_6 : i32
    scf.if %25 {
      %c0 = arith.constant 0 : index
      %c0_7 = arith.constant 0 : index
      %c0_8 = arith.constant 0 : index
      %26 = vector.load %arg15[%c0, %c0_7, %c0_8] : memref<4x8x1xf32, #tpu.memory_space<vmem>>, vector<4x8x1xf32>
      %27 = tpu.reciprocal %26 : vector<4x8x1xf32> -> vector<4x8x1xf32>
      %c0_9 = arith.constant 0 : index
      %c0_10 = arith.constant 0 : index
      %c0_11 = arith.constant 0 : index
      %28 = vector.load %arg16[%c0_9, %c0_10, %c0_11] : memref<4x8x8xf32, #tpu.memory_space<vmem>>, vector<4x8x8xf32>
      %29 = vector.broadcast %27 : vector<4x8x1xf32> to vector<4x8x8xf32>
      %30 = arith.mulf %28, %29 : vector<4x8x8xf32>
      %31 = vector.extract_strided_slice %30 {offsets = [0, 0, 0], sizes = [1, 8, 8], strides = [1, 1, 1]} : vector<4x8x8xf32> to vector<1x8x8xf32>
      %32 = vector.shape_cast %31 : vector<1x8x8xf32> to vector<8x8xf32>
      %33 = arith.truncf %32 : vector<8x8xf32> to vector<8x8xbf16>
      %c0_12 = arith.constant 0 : index
      %c0_13 = arith.constant 0 : index
      %34 = vector.load %arg17[%c0_12, %c0_13] : memref<8x32xbf16, #tpu.memory_space<vmem>>, vector<8x8xbf16>
      tpu.vector_store %arg17[%c0_12, %c0_13], %33 {strides = array<i32>} : memref<8x32xbf16, #tpu.memory_space<vmem>>, vector<8x8xbf16>,
      %35 = vector.extract_strided_slice %30 {offsets = [1, 0, 0], sizes = [1, 8, 8], strides = [1, 1, 1]} : vector<4x8x8xf32> to vector<1x8x8xf32>
      %36 = vector.shape_cast %35 : vector<1x8x8xf32> to vector<8x8xf32>
      %37 = arith.truncf %36 : vector<8x8xf32> to vector<8x8xbf16>
      %c0_14 = arith.constant 0 : index
      %c8 = arith.constant 8 : index
      %38 = vector.load %arg17[%c0_14, %c8] : memref<8x32xbf16, #tpu.memory_space<vmem>>, vector<8x8xbf16>
      tpu.vector_store %arg17[%c0_14, %c8], %37 {strides = array<i32>} : memref<8x32xbf16, #tpu.memory_space<vmem>>, vector<8x8xbf16>,
      %39 = vector.extract_strided_slice %30 {offsets = [2, 0, 0], sizes = [1, 8, 8], strides = [1, 1, 1]} : vector<4x8x8xf32> to vector<1x8x8xf32>
      %40 = vector.shape_cast %39 : vector<1x8x8xf32> to vector<8x8xf32>
      %41 = arith.truncf %40 : vector<8x8xf32> to vector<8x8xbf16>
      %c0_15 = arith.constant 0 : index
      %c16 = arith.constant 16 : index
      %42 = vector.load %arg17[%c0_15, %c16] : memref<8x32xbf16, #tpu.memory_space<vmem>>, vector<8x8xbf16>
      tpu.vector_store %arg17[%c0_15, %c16], %41 {strides = array<i32>} : memref<8x32xbf16, #tpu.memory_space<vmem>>, vector<8x8xbf16>,
      %43 = vector.extract_strided_slice %30 {offsets = [3, 0, 0], sizes = [1, 8, 8], strides = [1, 1, 1]} : vector<4x8x8xf32> to vector<1x8x8xf32>
      %44 = vector.shape_cast %43 : vector<1x8x8xf32> to vector<8x8xf32>
      %45 = arith.truncf %44 : vector<8x8xf32> to vector<8x8xbf16>
      %c0_16 = arith.constant 0 : index
      %c24 = arith.constant 24 : index
      %46 = vector.load %arg17[%c0_16, %c24] : memref<8x32xbf16, #tpu.memory_space<vmem>>, vector<8x8xbf16>
      tpu.vector_store %arg17[%c0_16, %c24], %45 {strides = array<i32>} : memref<8x32xbf16, #tpu.memory_space<vmem>>, vector<8x8xbf16>,
      %c0_17 = arith.constant 0 : index
      %c0_18 = arith.constant 0 : index
      %47 = vector.load %arg17[%c0_17, %c0_18] : memref<8x32xbf16, #tpu.memory_space<vmem>>, vector<8x32xbf16>
      %c0_19 = arith.constant 0 : index
      %c0_20 = arith.constant 0 : index
      %48 = vector.load %arg8[%c0_19, %c0_20] : memref<32x32xbf16, #tpu.memory_space<vmem>>, vector<32x32xbf16>
      %cst = arith.constant dense<0.000000e+00> : vector<8x32xf32>
      %49 = tpu.matmul %47, %48, %cst {dimension_numbers = #tpu.dot_dimension_numbers<[1], [0], [0], [1], [0, 0, 1, 1], [], []>} : vector<8x32xbf16>, vector<32x32xbf16>, vector<8x32xf32> -> vector<8x32xf32>
      %c0_21 = arith.constant 0 : index
      %c0_22 = arith.constant 0 : index
      %50 = vector.load %arg9[%c0_21, %c0_22] : memref<1x32xf32, #tpu.memory_space<vmem>>, vector<1x32xf32>
      %51 = vector.broadcast %50 : vector<1x32xf32> to vector<8x32xf32>
      %52 = arith.addf %49, %51 : vector<8x32xf32>
      %c0_23 = arith.constant 0 : index
      %c0_24 = arith.constant 0 : index
      %c0_25 = arith.constant 0 : index
      %53 = vector.load %arg10[%c0_23, %c0_24, %c0_25] : memref<1x8x32xf32, #tpu.memory_space<vmem>>, vector<1x8x32xf32>
      %54 = vector.shape_cast %53 : vector<1x8x32xf32> to vector<8x32xf32>
      %55 = vector.shape_cast %52 : vector<8x32xf32> to vector<1x8x32xf32>
      tpu.vector_store %arg10[%c0_23, %c0_24, %c0_25], %55 {strides = array<i32>} : memref<1x8x32xf32, #tpu.memory_space<vmem>>, vector<1x8x32xf32>,
    } else {
    }
    return
  }
  func.func @transform_0(%arg0: i32, %arg1: i32, %arg2: memref<1xi32, #tpu.memory_space<smem>>, %arg3: memref<1xi32, #tpu.memory_space<smem>>, %arg4: memref<1xi32, #tpu.memory_space<smem>>) -> (i32, i32, i32) {
    %c0_i32 = arith.constant 0 : i32
    %c0_i32_0 = arith.constant 0 : i32
    %c0_i32_1 = arith.constant 0 : i32
    return %arg0, %c0_i32, %c0_i32_0 : i32, i32, i32
  }
  func.func @transform_1(%arg0: i32, %arg1: i32, %arg2: memref<1xi32, #tpu.memory_space<smem>>, %arg3: memref<1xi32, #tpu.memory_space<smem>>, %arg4: memref<1xi32, #tpu.memory_space<smem>>) -> (i32, i32) {
    %c0_i32 = arith.constant 0 : i32
    %c0_i32_0 = arith.constant 0 : i32
    %c0_i32_1 = arith.constant 0 : i32
    return %c0_i32, %c0_i32_0 : i32, i32
  }
  func.func @transform_2(%arg0: i32, %arg1: i32, %arg2: memref<1xi32, #tpu.memory_space<smem>>, %arg3: memref<1xi32, #tpu.memory_space<smem>>, %arg4: memref<1xi32, #tpu.memory_space<smem>>) -> (i32, i32) {
    %c0_i32 = arith.constant 0 : i32
    %c0_i32_0 = arith.constant 0 : i32
    %c0_i32_1 = arith.constant 0 : i32
    return %c0_i32, %c0_i32_0 : i32, i32
  }
  func.func @transform_3(%arg0: i32, %arg1: i32, %arg2: memref<1xi32, #tpu.memory_space<smem>>, %arg3: memref<1xi32, #tpu.memory_space<smem>>, %arg4: memref<1xi32, #tpu.memory_space<smem>>) -> (i32, i32) {
    %c0_i32 = arith.constant 0 : i32
    %c0_i32_0 = arith.constant 0 : i32
    %c0_i32_1 = arith.constant 0 : i32
    return %c0_i32, %c0_i32_0 : i32, i32
  }
  func.func @transform_4(%arg0: i32, %arg1: i32, %arg2: memref<1xi32, #tpu.memory_space<smem>>, %arg3: memref<1xi32, #tpu.memory_space<smem>>, %arg4: memref<1xi32, #tpu.memory_space<smem>>) -> (i32, i32) {
    %c0_i32 = arith.constant 0 : i32
    %c0_i32_0 = arith.constant 0 : i32
    %c0_i32_1 = arith.constant 0 : i32
    return %c0_i32, %c0_i32_0 : i32, i32
  }
  func.func @transform_5(%arg0: i32, %arg1: i32, %arg2: memref<1xi32, #tpu.memory_space<smem>>, %arg3: memref<1xi32, #tpu.memory_space<smem>>, %arg4: memref<1xi32, #tpu.memory_space<smem>>) -> (i32, i32, i32) {
    %0 = arith.index_cast %arg1 : i32 to index
    %1 = memref.load %arg2[%0] : memref<1xi32, #tpu.memory_space<smem>>
    %c0_i32 = arith.constant 0 : i32
    %c0_i32_0 = arith.constant 0 : i32
    return %arg0, %1, %c0_i32 : i32, i32, i32
  }
}

</mosaic_0001>

<bundles_post_ra>
// kernel: tpu_custom_call.1
= control target key start
LH: loop header
LB: loop body
LE: loop exit
PB: predicated region body
PF: predicated region fallthrough
CT: control target
= control target key end

     0   :  { %s2947_s0 = inlined_call_operand.<no memory space> [shape: s32[1], index: 0, kind: input, shape index: {}]   ;;  %s2948_s1 = inlined_call_operand.<no memory space> [shape: s32[1], index: 1, kind: input, shape index: {}]   ;;  %s2949_s2 = inlined_call_operand.<no memory space> [shape: s32[1], index: 2, kind: input, shape index: {}]   ;;  %s2950_s3 = inlined_call_operand.hbm [shape: bf16[2,8,32], index: 3, kind: input, shape index: {}]   ;;  %s2951_s4 = inlined_call_operand.hbm [shape: bf16[32,96], index: 4, kind: input, shape index: {}]   ;;  %s2952_s5 = inlined_call_operand.vmem [shape: f32[1,96], index: 5, kind: input, shape index: {}]   ;;  %s2953_s6 = inlined_call_operand.hbm [shape: bf16[32,32], index: 6, kind: input, shape index: {}]   ;;  %s2954_s7 = inlined_call_operand.vmem [shape: f32[1,32], index: 7, kind: input, shape index: {}]   ;;  %s2955_s8 = inlined_call_operand.hbm [shape: f32[2,8,32], index: 8, kind: output, shape index: {}]  }
   0x1   :  { %2962 = sst [smem:[#allocation25_spill]] %s2951_s4 }
   0x2   :  { %2963 = sst [smem:[#allocation26_spill]] %s2953_s6 }
   0x3   :  { %13 = sst [smem:[#allocation10]] %s2947_s0 }
   0x4   :  { %14 = sst [smem:[#allocation11]] %s2948_s1 }
   0x5   :  { %15 = sst [smem:[#allocation12]] %s2949_s2 }
   0x6   :  { %16 = vsyncpa [#allocation14], 0 }
   0x7   :  { %18 = vsyncpa [#allocation14 + $0x1], 0 }
   0x8   :  { %19 = vsyncpa [#allocation17], 0 }
   0x9   :  { %20 = vsyncpa [#allocation15], 0 }
   0xa   :  { %22 = vsyncpa [#allocation15 + $0x1], 0  ;;  %s2496_s11 = smov 0   ;;  %s2498_s12 = smov 0  }
   0xb   :  { %s2500_s13 = smov 0   ;;  %s2502_s0 = smov 0  }
   0xc   :  { %s2504_s14 = smov 0   ;;  %s2506_s1 = smov 0  }
   0xd   :  { %s2508_s15 = smov 0   ;;  %s2510_s2 = smov 0  }
   0xe   :  { %s2512_s16 = smov 0  }
   0xf LB: > { %2964 = sst [smem:[#allocation23_spill]] %s2407_s16  ;;  %s1820_s17 = sadd.s32 4294967295, %s2407_s16   ;;  %s2407_s16 = sphi %s2512_s16, %s2989_s16   ;;  %s2403_s2 = sphi %s2510_s2, %s2988_s2   ;;  %s2399_s15 = sphi %s2508_s15, %s2987_s15   ;;  %s2395_s1 = sphi %s2506_s1, %s2986_s1   ;;  %s2391_s14 = sphi %s2504_s14, %s2985_s14   ;;  %s2387_s0 = sphi %s2502_s0, %s2984_s0   ;;  %s2383_s13 = sphi %s2500_s13, %s2983_s13   ;;  %s2379_s12 = sphi %s2498_s12, %s2982_s12   ;;  %s2375_s11 = sphi %s2496_s11, %s2981_s11  }
  0x10   : > { %s1821_s18 = sadd.s32 4294967294, %s2407_s16   ;;  %p60_p0 = scmp.ne.s32.totalorder %s2391_s14, %s2387_s0 }
  0x11   : > { %p2542_p1 = scmp.eq.s32.totalorder %s1820_s17, 0  ;;  %p171_p2 = scmp.ne.s32.totalorder %s2383_s13, %s2379_s12 }
  0x12   : > { %p172_p3 = scmp.eq.s32.totalorder %s1820_s17, 1  ;;  %p177_p5 = scmp.ne.s32.totalorder %s2379_s12, %s2375_s11 }
  0x13   : > { %s2965_s19 = scalar_select %p2542_p1, 1, 0 }
  0x14   : > { %p2550_p4 = por %p2542_p1, %p60_p0  ;;  %p2556_p6 = por %p172_p3, %p171_p2 }
  0x15   : > { %p178_p7 = scmp.eq.s32.totalorder %s1821_s18, 1  ;;  %p1822_p8 = scmp.ge.s32.totalorder %s2407_s16, 1 }
  0x16   : > { %s2967_s21 = scalar_select %p2556_p6, 1, 0 }
  0x17   : > { %p185_p9 = scmp.lt.s32.totalorder %s2407_s16, 3  ;;  %p2562_p10 = por %p178_p7, %p177_p5 }
  0x18   : > { %s2409_s24 = smov [#allocation16]   ;;  %s2410_s27 = smov [#allocation18]  }
  0x19   : > { %s2968_s22 = scalar_select %p2562_p10, 1, 0 }
  0x1a   : > { %p2566_p11 = pnand %p1822_p8, %p185_p9  ;;  %s197_s25 = sshll.u32 %s2409_s24, 4  ;;  %s198_s25 = int_to_ptr.vmem [resolvable:$true] %s197_s25 }
  0x1b   : > { %s213_s28 = sshll.u32 %s2410_s27, 4  ;;  %s2230_s29 = scalar_lea.vmem %s198_s25, 256  ;;  %s214_s28 = int_to_ptr.vmem [resolvable:$true] %s213_s28 }
  0x1c   : > { %p2045_p12 = pneg %p2566_p11  ;;  %p2231_p3 = scmp.ne.s32.totalorder %s198_s25, %s2230_s29 }
  0x1d   : > { %p2238_p8 = scmp.lt.s32.totalorder %s198_s25, %s198_s25  ;;  %p2239_p9 = scmp.lt.s32.totalorder %s2230_s29, %s2230_s29 }
  0x1e   : > { %p2575_p0 = pnand %p2045_p12, %p2542_p1 }
  0x1f   : > { %p2240_p13 = por %p2239_p9, %p2238_p8 }
  0x20   : > { %p2221_p2 = pneg %p2575_p0 }
  0x22   : > { %p2233_p5 = pnand %p2231_p3, %p2221_p2 }
  0x24   : > { %p2234_p7 = pneg %p2233_p5 }
  0x26   : > { %p2241_p12 = pnand %p2240_p13, %p2234_p7 }
  0x28   : > { %2244 = shalt.err (!%p2241_p12)
}
  0x29   : > { %s2411_s30 = smov 64   ;;  %s2412_s9 = smov 4  }
  0x2a   : > { %s2971_s4 = sld [smem:[#allocation25_spill]]  ;;  %s2256_s17 = scalar_lea.vmem %s214_s28, 256 }
  0x2b   : > { %p2257_p10 = scmp.ne.s32.totalorder %s214_s28, %s2256_s17  ;;  %p2264_p6 = scmp.lt.s32.totalorder %s214_s28, %s214_s28 }
  0x2c   : > { %p2265_p1 = scmp.lt.s32.totalorder %s2256_s17, %s2256_s17 }
  0x2d   : > { %p2259_p3 = pnand %p2257_p10, %p2221_p2 }
  0x2e   : > { %p2266_p8 = por %p2265_p1, %p2264_p6 }
  0x2f   : > { %p2260_p5 = pneg %p2259_p3 }
  0x30   : > { %2048 = dma.hbm_to_vmem [thread:$0]  (!%p2575_p0), %s2971_s4, 256, %s198_s25, [#allocation17], %s2411_s30, %s2411_s30, %s2412_s9  }
  0x31   : > { %p2267_p13 = pnand %p2266_p8, %p2260_p5 }
  0x33   : > { %2270 = shalt.err (!%p2267_p13)
}
  0x34   : > { %s2972_s6 = sld [smem:[#allocation26_spill]]  ;;  %s47_s25 = sadd.s32 1, %s2395_s1 }
  0x35   : > { %s40_s27 = sadd.s32 1, %s2403_s2  ;;  %p54_p1 = scmp.ne.s32.totalorder %s2395_s1, %s2391_s14 }
  0x36   : > { %p42_p6 = scmp.ge.s32.totalorder %s40_s27, 2  ;;  %p55_p10 = scmp.eq.s32.totalorder %s2407_s16, 0 }
  0x37   : > { %s161_s26 = sadd.s32 1, %s2383_s13  ;;  %p2062_p7 = scmp.lt.s32.totalorder %s2407_s16, 2 }
  0x38   : > { %s2991_s27 = smov (%p42_p6, %s40_s27), 0  ;;  %p56_p2 = por %p55_p10, %p54_p1 }
  0x39   : > { %2973 = sst [smem:[#allocation24_spill]] %s2991_s27  ;;  %s44_s29 = ssub.s32 %s2403_s2, %s2991_s27 }
  0x3a   : > { %2051 = dma.hbm_to_vmem [thread:$0]  (!%p2575_p0), %s2972_s6, 256, %s214_s28, [#allocation17], %s2411_s30, %s2411_s30, %s2412_s9  }
  0x3b   : > { %s230_s10 = sand.u32 1, %s2395_s1   ;;  %p45_p9 = scmp.eq.s32.totalorder %s44_s29, 0 }
  0x3c   : > { %s1826_s0 = sshll.u32 %s230_s10, 2  ;;  %s1827_s17 = sshll.u32 %s2403_s2, 6 }
  0x3d   : > { %s2611_s18 = scalar_select %p45_p9, %s2395_s1, %s47_s25  }
  0x3e   : > { %s239_s9 = scalar_lea.hbm %s2950_s3, %s1827_s17  ;;  %s234_s24 = scalar_lea.vmem [#allocation13], %s1826_s0 }
  0x3f   : > { %s241_s4 = sshll.u32 %s234_s24, 4  ;;  %p2616_p0 = pnand %p2062_p7, %p56_p2  ;;  %s242_s4 = int_to_ptr.vmem [resolvable:$true] %s241_s4 }
  0x40   : > { %s2621_s16 = scalar_select %p45_p9, %s2383_s13, %s161_s26  }
  0x41   : > { %s231_s27 = scalar_lea.sflag [#allocation14], %s230_s10  ;;  %p2273_p12 = pneg %p2616_p0 }
  0x42   : > { %s2284_s29 = scalar_lea.vmem %s242_s4, 64  ;;  %s2413_s25 = smov [#allocation13]  }
  0x43   : > { %p2285_p3 = scmp.ne.s32.totalorder %s242_s4, %s2284_s29  ;;  %s2289_s28 = sshll.u32 %s2413_s25, 4  ;;  %s2290_s28 = int_to_ptr.vmem [resolvable:$false] %s2289_s28 }
  0x44   : > { %s2291_s0 = scalar_lea.vmem %s2290_s28, 128  ;;  %p2292_p13 = scmp.lt.s32.totalorder %s242_s4, %s2290_s28 }
  0x45   : > { %p2287_p5 = pnand %p2285_p3, %p2273_p12  ;;  %p2293_p1 = scmp.lt.s32.totalorder %s2291_s0, %s2284_s29 }
  0x47   : > { %p2288_p8 = pneg %p2287_p5  ;;  %p2294_p6 = por %p2293_p1, %p2292_p13 }
  0x49   : > { %p2295_p10 = pnand %p2294_p6, %p2288_p8 }
  0x4b   : > { %2298 = shalt.err (!%p2295_p10)
}
  0x4c   : > { %2055 = dma.hbm_to_vmem [thread:$0]  (!%p2616_p0), %s239_s9, 64, %s242_s4, %s231_s27  }
  0x4d   : > { %250 = sbr.rel (%p2566_p11) target bundleno = 2357 (0x935), region = 40  ;;  %s252_s26 = sand.u32 (!%p2566_p11), 1, %s2391_s14  }
  0x4e   : > { %s1829_s10 = sshll.u32 (!%p2566_p11), %s252_s26, 2  ;;  %s253_s17 = scalar_lea.sflag (!%p2566_p11), [#allocation14], %s252_s26 }
  0x4f   : > { %s256_s30 = scalar_lea.vmem (!%p2566_p11), [#allocation13], %s1829_s10 }
  0x52   : > { %2362 = dma.done.wait (%p2550_p4), %s253_s17, 64  }
  0x53   : > { %2364 = vsyncadd (%p2550_p4), %s253_s17, 4294967232  ;;  %p2975_p2 = scmp.ne.s32.totalorder %s2965_s19, 0 }
  0x55   : > { %2366 = dma.done.wait (%p2975_p2), [#allocation17], 512  }
  0x56   : > { %2368 = vsyncadd (%p2975_p2), [#allocation17], 4294966784  ;;  %s288_s4 = sand.u32 1, %s2379_s12   ;;  %s293_s6 = sld [smem:[#allocation10]]  ;;  %v2414_v0 = vmov 0.0   ;;  %vm2415_vm0 = vmmov 0  }
  0x57   : > { %s2641_s23 = sshll.u32 %s288_s4, 3  ;;  %1921 = vmatprep.subr.bf16.mxu0 %v2414_v0  ;;  %1925 = vmatprep.mubr.msk.bf16.mxu0 %vm2415_vm0, %v2414_v0  ;;  %s2643_s27 = sld [smem:[#allocation11]]  ;;  %v2169_v1 = vld [vmem:[#allocation16 + $0x8] sm:$0xff]   ;;  %v2170_v2 = vld [vmem:[#allocation16] sm:$0xff]   ;;  %v301_v3 = vld [vmem:[%s256_s30] sm:$0xf] }
  0x58   : > { %1922 = vmatpush3.bf16.msra.mxu0 %v2169_v1  ;;  %vm325_vm1 = vcmask 261120   ;;  %v1835_v4 = vld [vmem:[%s2952_s5] ss:$0 sm:$0xff]  ;;  %vm371_vm2 = vcmask 60416   ;;  %s2416_s29 = smov 88   ;;  %s2417_s25 = smov 96  }
  0x59   : > { %1923 = vmatprep.subr.bf16.mxu0 %v2414_v0  ;;  %s2418_s28 = smov 48   ;;  %s2419_s0 = smov 64  }
  0x5a   : > { %s2420_s26 = smov 56   ;;  %s2421_s10 = smov 120  }
  0x5b   : > { %s2422_s17 = smov 80   ;;  %s2423_s30 = smov 112  }
  0x5c   : > { %s2645_s20 = sshll.u32 %s293_s6, 3  ;;  %1924 = vmatpush3.bf16.msra.mxu0 %v2170_v2  ;;  %s2424_s6 = smov 104  }
  0x5d   : > { %s2648_s9 = sshll.u32 %s2643_s27, 3  ;;  %s2425_s19 = smov 72  }
  0x5e   : > { %s2426_s24 = smov 40   ;;  %p1841_p4 = scmp.ne.s32.totalorder %s2643_s27, 0 }
  0x5f   : > { %1926 = vmatmul.mubr.msk.bf16.vlgmr.msra.gmra.mxu0 %vm325_vm1, %v301_v3 }
 0x11f   : > { %v363_v5 = vpop.f32.mrf.mxu0 }
 0x120   : > { %v364_v6 = vadd.f32 %v1835_v4, %v363_v5 }
 0x121   : > { %v1927_v7 = vpop.f32.mrf.mxu0 }
 0x122   : > { %v369_v8 = vmul.f32 0.35355338, %v364_v6  ;;  %v1878_v9 = vpack.c.bf16 %v364_v6, %v364_v6 }
 0x123   : > { %v366_v10 = vpop.f32.mrf.mxu0 }
 0x124   : > { %v370_v11 = vpack.c.bf16 %v369_v8, %v369_v8  ;;  %395 = vrot.lane.b32.xlu1 %v1878_v9, %s2416_s29  ;;  %377 = vrot.lane.b32.xlu0 %v1878_v9, %s2417_s25  ;;  %s290_s29 = scalar_lea.vmem [#allocation19], %s2641_s23 }
 0x125   : > { %v1928_v12 = vpop.f32.mrf.mxu0 }
 0x126   : > { %372 = vst.msk [vmem:[#allocation2] sm:$0xf] %vm371_vm2, %v370_v11 }
 0x128   : > { %420 = vrot.lane.b32.xlu1 %v1878_v9, %s2418_s28  ;;  %381 = vrot.lane.b32.xlu0 %v1878_v9, %s2419_s0 }
 0x12c   : > { %401 = vrot.lane.b32.xlu0 %v1878_v9, %s2420_s26  ;;  %388 = vrot.lane.b32.xlu1 %v370_v11, %s2421_s10 }
 0x130   : > { %414 = vrot.lane.b32.xlu0 %v1878_v9, %s2422_s17  ;;  %407 = vrot.lane.b32.xlu1 %v370_v11, %s2423_s30 }
 0x134   : > { %426 = vrot.lane.b32.xlu0 %v370_v11, %s2424_s6  ;;  %433 = vrot.lane.b32.xlu1 %v1878_v9, %s2425_s19 }
 0x138   : > { %439 = vrot.lane.b32.xlu0 %v1878_v9, %s2426_s24 }
 0x196   : > { %v396_v13 = vpop.permute.xlu1 %395  ;;  %v378_v14 = vpop.permute.xlu0 %377 }
 0x197   : > { %400 = vst.msk [vmem:[#allocation3 + $0x4] sm:$0xf] %vm371_vm2, %v396_v13  ;;  %380 = vst.msk [vmem:[#allocation3] sm:$0xf] %vm371_vm2, %v378_v14 }
 0x19a   : > { %v421_v15 = vpop.permute.xlu1 %420  ;;  %v382_v16 = vpop.permute.xlu0 %381 }
 0x19b   : > { %425 = vst.msk [vmem:[#allocation4 + $0x8] sm:$0xf] %vm371_vm2, %v421_v15  ;;  %384 = vst.msk [vmem:[#allocation4] sm:$0xf] %vm371_vm2, %v382_v16 }
 0x19e   : > { %v402_v17 = vpop.permute.xlu0 %401  ;;  %v389_v18 = vpop.permute.xlu1 %388 }
 0x19f   : > { %406 = vst.msk [vmem:[#allocation4 + $0x4] sm:$0xf] %vm371_vm2, %v402_v17  ;;  %394 = vst.msk [vmem:[#allocation2 + $0x4] sm:$0xf] %vm371_vm2, %v389_v18 }
 0x1a2   : > { %v415_v19 = vpop.permute.xlu0 %414  ;;  %v408_v20 = vpop.permute.xlu1 %407 }
 0x1a3   : > { %419 = vst.msk [vmem:[#allocation3 + $0x8] sm:$0xf] %vm371_vm2, %v415_v19  ;;  %413 = vst.msk [vmem:[#allocation2 + $0x8] sm:$0xf] %vm371_vm2, %v408_v20 }
 0x1a6   : > { %v427_v21 = vpop.permute.xlu0 %426  ;;  %v434_v22 = vpop.permute.xlu1 %433 }
 0x1a7   : > { %432 = vst.msk [vmem:[#allocation2 + $0xc] sm:$0xf] %vm371_vm2, %v427_v21  ;;  %438 = vst.msk [vmem:[#allocation3 + $0xc] sm:$0xf] %vm371_vm2, %v434_v22  ;;  %448 = sbr.rel (%p1841_p4) target bundleno = 435 (0x1b3), region = 60 }
 0x1aa   : > { %v440_v23 = vpop.permute.xlu0 %439 }
 0x1ab   : > { %444 = vst.msk [vmem:[#allocation4 + $0xc] sm:$0xf] %vm371_vm2, %v440_v23 }
 0x1ac   : > { %vm449_vm3 = vcmask 7168   ;;  %vm458_vm4 = vcmask 64512   ;;  %v2427_v24 = vmov -1e+30   ;;  %v2428_v25 = vmov 0.0  }
 0x1ad   : > { %450 = vst.msk [vmem:[#allocation5] sm:$0xff] %vm449_vm3, %v2427_v24  ;;  %451 = vst.msk [vmem:[#allocation5 + $0x8] sm:$0xff] %vm449_vm3, %v2427_v24 }
 0x1ae   : > { %452 = vst.msk [vmem:[#allocation5 + $0x10] sm:$0xff] %vm449_vm3, %v2427_v24  ;;  %453 = vst.msk [vmem:[#allocation5 + $0x18] sm:$0xff] %vm449_vm3, %v2427_v24 }
 0x1af   : > { %454 = vst.msk [vmem:[#allocation6] sm:$0xff] %vm449_vm3, %v2428_v25  ;;  %455 = vst.msk [vmem:[#allocation6 + $0x8] sm:$0xff] %vm449_vm3, %v2428_v25 }
 0x1b0   : > { %456 = vst.msk [vmem:[#allocation6 + $0x10] sm:$0xff] %vm449_vm3, %v2428_v25  ;;  %457 = vst.msk [vmem:[#allocation6 + $0x18] sm:$0xff] %vm449_vm3, %v2428_v25 }
 0x1b1   : > { %459 = vst.msk [vmem:[#allocation7] sm:$0xff] %vm458_vm4, %v2428_v25  ;;  %460 = vst.msk [vmem:[#allocation7 + $0x8] sm:$0xff] %vm458_vm4, %v2428_v25 }
 0x1b2   : > { %461 = vst.msk [vmem:[#allocation7 + $0x10] sm:$0xff] %vm458_vm4, %v2428_v25  ;;  %462 = vst.msk [vmem:[#allocation7 + $0x18] sm:$0xff] %vm458_vm4, %v2428_v25 }
 0x1b3 PF: > { %s463_s27 = sadd.s32 7, %s2648_s9 }
 0x1b4   : > { %p1842_p11 = scmp.le.s32.totalorder %s463_s27, %s2645_s20 }
 0x1b5   : > { %s476_s25 = sshra.s32 (!%p1842_p11), %s2648_s9, 3  ;;  %s468_s28 = sshra.s32 (!%p1842_p11), %s2645_s20, 3 }
 0x1b6   : > { %467 = sbr.rel (%p1842_p11) target bundleno = 1143 (0x477), region = 64  ;;  %s2676_s0 = sshll.u32 (!%p1842_p11), %s476_s25, 2 }
 0x1b7   : > { %s479_s26 = scalar_lea.vmem (!%p1842_p11), [#allocation3], %s2676_s0  ;;  %s1843_s10 = sshll.u32 (!%p1842_p11), %s468_s28, 2 }
 0x1b8   : > { %s471_s17 = scalar_lea.vmem (!%p1842_p11), [#allocation2], %s1843_s10  ;;  %s485_s30 = scalar_lea.vmem (!%p1842_p11), [#allocation4], %s2676_s0 }
 0x1bb   : > { %v2429_v26 = vmov 0.0   ;;  %vm490_vm5 = vcmask 64512   ;;  %vm2430_vm6 = vmmov 0   ;;  %v480_v27 = vld [vmem:[%s479_s26] sm:$0xf]  ;;  %v675_v39 = vlaneseq  ;;  %v690_v7 = vld [vmem:[#allocation5] sm:$0xff] }
 0x1bc   : > { %1929 = vmatprep.subr.bf16.mxu0 %v2429_v26  ;;  %1935 = vmatprep.subr.bf16.mxu1 %v2429_v26  ;;  %v481_v28 = vld [vmem:[%s479_s26 + $0x4] sm:$0xf]  ;;  %v495_v29 = vsel %vm490_vm5, %v480_v27, 0  ;;  %v482_v31 = vld [vmem:[%s479_s26 + $0x8] sm:$0xf]  ;;  %v677_v42 = vstv %s2645_s20  ;;  %v681_v43 = vstv %s2648_s9  ;;  %v2431_v6 = vmov 0  }
 0x1bd   : > { %1931 = vmatprep.mubr.msk.bf16.mxu0 %vm2430_vm6, %v2429_v26  ;;  %1937 = vmatprep.mubr.msk.bf16.mxu1 %vm2430_vm6, %v2429_v26  ;;  %v541_v30 = vsel %vm490_vm5, %v481_v28, 0  ;;  %v483_v32 = vld [vmem:[%s479_s26 + $0xc] sm:$0xf]  ;;  %v472_v33 = vld [vmem:[%s471_s17] sm:$0xf]  ;;  %v587_v35 = vsel %vm490_vm5, %v482_v31, 0 }
 0x1be   : > { %1930 = vmatpush3.bf16.xpose.msra.mxu0 %v495_v29  ;;  %1936 = vmatpush3.bf16.xpose.msra.mxu1 %v541_v30  ;;  %v473_v34 = vld [vmem:[%s471_s17 + $0x4] sm:$0xf]  ;;  %v633_v36 = vsel %vm490_vm5, %v483_v32, 0  ;;  %v474_v37 = vld [vmem:[%s471_s17 + $0x8] sm:$0xf]  ;;  %v676_v40 = vshrl.u32 %v675_v39, 7 }
 0x1bf   : > { %1941 = vmatprep.subr.bf16.mxu0 %v2429_v26  ;;  %1947 = vmatprep.subr.bf16.mxu1 %v2429_v26  ;;  %v475_v38 = vld [vmem:[%s471_s17 + $0xc] sm:$0xf]  ;;  %v680_v41 = vand.u32 127, %v675_v39  ;;  %vm778_vm8 = vcmask 7168   ;;  %v2725_v10 = vld [vmem:[#allocation5 + $0x8] sm:$0xff]  ;;  %v692_v15 = vld [vmem:[#allocation5 + $0x10] sm:$0xff] }
 0x1c0   : > { %v678_v44 = vadd.s32 %v677_v42, %v676_v40  ;;  %2171 = vset.pattern.permute.xlu0 %v2431_v6  ;;  %2172 = vset.pattern.permute.xlu1 %v2431_v6  ;;  %v2736_v19 = vld [vmem:[#allocation5 + $0x18] sm:$0xff]  ;;  %v486_v23 = vld [vmem:[%s485_s30] sm:$0xf]  ;;  %vm818_vm9 = vcmask 1043456   ;;  %v487_v27 = vld [vmem:[%s485_s30 + $0x4] sm:$0xf] }
 0x1c1   : > { %v682_v45 = vadd.s32 %v681_v43, %v680_v41  ;;  %v820_v25 = vsel %vm818_vm9, %v486_v23, 0  ;;  %v866_v28 = vsel %vm818_vm9, %v487_v27, 0  ;;  %v488_v30 = vld [vmem:[%s485_s30 + $0x8] sm:$0xf]  ;;  %v489_v32 = vld [vmem:[%s485_s30 + $0xc] sm:$0xf] }
 0x1c2   : > { %v912_v31 = vsel %vm818_vm9, %v488_v30, 0 }
 0x1c3   : > { %vm683_vm7 = vcmp.ge.s32.totalorder %v678_v44, %v682_v45 }
 0x1c5   : > { %1932 = vmatmul.mubr.msk.bf16.vlgmr.msra.gmra.mxu0 %vm490_vm5, %v472_v33  ;;  %1938 = vmatmul.mubr.msk.bf16.vlgmr.msra.gmra.mxu1 %vm490_vm5, %v473_v34  ;;  %v958_v33 = vsel %vm818_vm9, %v489_v32, 0 }
 0x1c6   : > { %1942 = vmatpush3.bf16.xpose.msra.mxu0 %v587_v35  ;;  %1948 = vmatpush3.bf16.xpose.msra.mxu1 %v633_v36 }
 0x1c7   : > { %1943 = vmatprep.mubr.msk.bf16.mxu0 %vm2430_vm6, %v2429_v26  ;;  %1949 = vmatprep.mubr.msk.bf16.mxu1 %vm2430_vm6, %v2429_v26 }
 0x1c8   : > { %1953 = vmatprep.subr.bf16.mxu0 %v2429_v26  ;;  %1959 = vmatprep.subr.bf16.mxu1 %v2429_v26 }
 0x1cd   : > { %1944 = vmatmul.mubr.msk.bf16.vlgmr.msra.gmra.mxu0 %vm490_vm5, %v474_v37  ;;  %1950 = vmatmul.mubr.msk.bf16.vlgmr.msra.gmra.mxu1 %vm490_vm5, %v475_v38 }
 0x1ce   : > { %1955 = vmatprep.mubr.msk.bf16.mxu0 %vm2430_vm6, %v2429_v26  ;;  %1961 = vmatprep.mubr.msk.bf16.mxu1 %vm2430_vm6, %v2429_v26 }
 0x1cf   : > { %1954 = vmatpush3.bf16.msra.mxu0 %v820_v25  ;;  %1960 = vmatpush3.bf16.msra.mxu1 %v866_v28  ;;  %v785_v25 = vld [vmem:[#allocation7 + $0x10] sm:$0xff] }
 0x1d0   : > { %1965 = vmatprep.subr.bf16.mxu0 %v2429_v26  ;;  %1971 = vmatprep.subr.bf16.mxu1 %v2429_v26 }
 0x285   : > { %v531_v46 = vpop.f32.mrf.mxu0  ;;  %v577_v47 = vpop.f32.mrf.mxu1 }
 0x286   : > { %v2706_v48 = vsel %vm683_vm7, %v531_v46, -1e+30  ;;  %v2709_v49 = vsel %vm683_vm7, %v577_v47, -1e+30 }
 0x287   : > { %v1933_v50 = vpop.f32.mrf.mxu0  ;;  %v1939_v51 = vpop.f32.mrf.mxu1  ;;  %v694_v52 = vsel %vm490_vm5, %v2706_v48, -inf  ;;  %v697_v55 = vsel %vm490_vm5, %v2709_v49, -inf }
 0x288   : > { %695 = vmax.xlane.f32.xlu0 %v694_v52 }
 0x289   : > { %v534_v53 = vpop.f32.mrf.mxu0  ;;  %v580_v54 = vpop.f32.mrf.mxu1 }
 0x28b   : > { %v1934_v56 = vpop.f32.mrf.mxu0  ;;  %v1940_v57 = vpop.f32.mrf.mxu1 }
 0x28c   : > { %698 = vmax.xlane.f32.xlu0 %v697_v55 }
 0x28d   : > { %v623_v58 = vpop.f32.mrf.mxu0  ;;  %v669_v59 = vpop.f32.mrf.mxu1 }
 0x28e   : > { %v2716_v60 = vsel %vm683_vm7, %v623_v58, -1e+30  ;;  %v2719_v61 = vsel %vm683_vm7, %v669_v59, -1e+30 }
 0x28f   : > { %v1945_v62 = vpop.f32.mrf.mxu0  ;;  %v1951_v63 = vpop.f32.mrf.mxu1  ;;  %v700_v0 = vsel %vm490_vm5, %v2716_v60, -inf  ;;  %v703_v3 = vsel %vm490_vm5, %v2719_v61, -inf }
 0x290   : > { %701 = vmax.xlane.f32.xlu1 %v700_v0  ;;  %v754_v0 = vld [vmem:[#allocation6] sm:$0xff] }
 0x291   : > { %v626_v1 = vpop.f32.mrf.mxu0  ;;  %v672_v2 = vpop.f32.mrf.mxu1 }
 0x293   : > { %v1946_v4 = vpop.f32.mrf.mxu0  ;;  %v1952_v5 = vpop.f32.mrf.mxu1 }
 0x294   : > { %704 = vmax.xlane.f32.xlu1 %v703_v3  ;;  %v755_v3 = vld [vmem:[#allocation6 + $0x8] sm:$0xff] }
 0x311   : > { %v696_v8 = vpop.xlane.xlu0 %695 }
 0x312   : > { %v706_v9 = vmax.f32 %v690_v7, %v696_v8 }
 0x314   : > { %v710_v11 = vsub.f32 %v690_v7, %v706_v9  ;;  %1008 = vst.msk [vmem:[#allocation5] sm:$0xff] %vm778_vm8, %v706_v9  ;;  %724 = vperm.xlu0 %2171, %v706_v9   ;;  %v756_v9 = vld [vmem:[#allocation6 + $0x10] sm:$0xff] }
 0x315   : > { %v699_v12 = vpop.xlane.xlu0 %698 }
 0x316   : > { %v714_v13 = vmul.f32 1.442695, %v710_v11  ;;  %v2729_v14 = vmax.f32 %v2725_v10, %v699_v12 }
 0x318   : > { %2173 = vpow2.f32 %v714_v13  ;;  %v711_v16 = vsub.f32 %v2725_v10, %v2729_v14  ;;  %1009 = vst.msk [vmem:[#allocation5 + $0x8] sm:$0xff] %vm778_vm8, %v2729_v14  ;;  %729 = vperm.xlu1 %2172, %v2729_v14   ;;  %v783_v10 = vld [vmem:[#allocation7] sm:$0xff]  ;;  %v757_v13 = vld [vmem:[#allocation6 + $0x18] sm:$0xff] }
 0x319   : > { %v702_v17 = vpop.xlane.xlu1 %701 }
 0x31a   : > { %v708_v18 = vmax.f32 %v692_v15, %v702_v17  ;;  %v716_v55 = vmul.f32 1.442695, %v711_v16  ;;  %v784_v16 = vld [vmem:[#allocation7 + $0x8] sm:$0xff] }
 0x31c   : > { %v712_v20 = vsub.f32 %v692_v15, %v708_v18  ;;  %1010 = vst.msk [vmem:[#allocation5 + $0x10] sm:$0xff] %vm778_vm8, %v708_v18  ;;  %734 = vperm.xlu1 %2172, %v708_v18  }
 0x31d   : > { %v705_v21 = vpop.xlane.xlu1 %704 }
 0x31e   : > { %v2740_v22 = vmax.f32 %v2736_v19, %v705_v21  ;;  %v718_v47 = vmul.f32 1.442695, %v712_v20 }
 0x320   : > { %v713_v24 = vsub.f32 %v2736_v19, %v2740_v22  ;;  %1011 = vst.msk [vmem:[#allocation5 + $0x18] sm:$0xff] %vm778_vm8, %v2740_v22  ;;  %739 = vperm.xlu1 %2172, %v2740_v22  }
 0x325   : > { %v2174_v29 = vpop.eup %2173 }
 0x326   : > { %789 = vperm.xlu1 %2172, %v2174_v29   ;;  %v758_v1 = vmul.f32 %v2174_v29, %v754_v0 }
 0x38f   : > { %v725_v34 = vpop.permute.xlu0 %724 }
 0x390   : > { %v742_v35 = vsub.f32 %v2706_v48, %v725_v34  ;;  %v786_v34 = vld [vmem:[#allocation7 + $0x18] sm:$0xff] }
 0x392   : > { %v746_v36 = vmul.f32 1.442695, %v742_v35 }
 0x393   : > { %v730_v37 = vpop.permute.xlu1 %729 }
 0x394   : > { %2175 = vpow2.f32 %v746_v36  ;;  %v743_v38 = vsub.f32 %v2709_v49, %v730_v37 }
 0x396   : > { %v748_v39 = vmul.f32 1.442695, %v743_v38 }
 0x397   : > { %v735_v40 = vpop.permute.xlu1 %734 }
 0x398   : > { %2177 = vpow2.f32 %v748_v39  ;;  %v744_v41 = vsub.f32 %v2716_v60, %v735_v40 }
 0x39a   : > { %v750_v42 = vmul.f32 1.442695, %v744_v41 }
 0x39b   : > { %v740_v43 = vpop.permute.xlu1 %739 }
 0x39c   : > { %2179 = vpow2.f32 %v750_v42  ;;  %v745_v44 = vsub.f32 %v2719_v61, %v740_v43 }
 0x39e   : > { %v752_v45 = vmul.f32 1.442695, %v745_v44 }
 0x3a0   : > { %2181 = vpow2.f32 %v752_v45 }
 0x3a1   : > { %v2176_v46 = vpop.eup %2175  ;;  %2183 = vpow2.f32 %v718_v47  ;;  %v790_v63 = vpop.permute.xlu1 %789 }
 0x3a2   : > { %v762_v48 = vsel %vm490_vm5, %v2176_v46, 0.0  ;;  %v811_v50 = vpack.c.bf16 %v2176_v46, %v2176_v46  ;;  %2185 = vpow2.f32 %v716_v55  ;;  %v807_v15 = vmul.f32 %v790_v63, %v783_v10 }
 0x3a3   : > { %763 = vadd.xlane.f32.xlu1 %v762_v48 }
 0x3a4   : > { %1956 = vmatmul.mubr.msk.bf16.vlgmr.msra.gmra.mxu0 %vm490_vm5, %v811_v50 }
 0x3a5   : > { %v2178_v49 = vpop.eup %2177  ;;  %1966 = vmatpush3.bf16.msra.mxu0 %v912_v31  ;;  %1967 = vmatprep.mubr.msk.bf16.mxu0 %vm2430_vm6, %v2429_v26 }
 0x3a6   : > { %v765_v51 = vsel %vm490_vm5, %v2178_v49, 0.0  ;;  %v812_v52 = vpack.c.bf16 %v2178_v49, %v2178_v49 }
 0x3a7   : > { %766 = vadd.xlane.f32.xlu0 %v765_v51 }
 0x3a8   : > { %1962 = vmatmul.mubr.msk.bf16.vlgmr.msra.gmra.mxu1 %vm490_vm5, %v812_v52 }
 0x3a9   : > { %v2180_v53 = vpop.eup %2179  ;;  %1972 = vmatpush3.bf16.msra.mxu1 %v958_v33  ;;  %1973 = vmatprep.mubr.msk.bf16.mxu1 %vm2430_vm6, %v2429_v26  ;;  %v720_v26 = vmul.f32 1.442695, %v713_v24 }
 0x3aa   : > { %v813_v54 = vpack.c.bf16 %v2180_v53, %v2180_v53  ;;  %v768_v60 = vsel %vm490_vm5, %v2180_v53, 0.0 }
 0x3ab   : > { %2187 = vpow2.f32 %v720_v26 }
 0x3ac   : > { %1968 = vmatmul.mubr.msk.bf16.vlgmr.msra.gmra.mxu0 %vm490_vm5, %v813_v54 }
 0x3ad   : > { %v2182_v56 = vpop.eup %2181 }
 0x3ae   : > { %v814_v57 = vpack.c.bf16 %v2182_v56, %v2182_v56  ;;  %v2184_v58 = vpop.eup %2183  ;;  %v771_v61 = vsel %vm490_vm5, %v2182_v56, 0.0 }
 0x3af   : > { %v2186_v59 = vpop.eup %2185  ;;  %v760_v11 = vmul.f32 %v2184_v58, %v756_v9 }
 0x3b0   : > { %1974 = vmatmul.mubr.msk.bf16.vlgmr.msra.gmra.mxu1 %vm490_vm5, %v814_v57  ;;  %v759_v5 = vmul.f32 %v2186_v59, %v755_v3 }
 0x3b4   : > { %799 = vperm.xlu1 %2172, %v2184_v58  }
 0x3b8   : > { %v2188_v62 = vpop.eup %2187 }
 0x3b9   : > { %v761_v19 = vmul.f32 %v2188_v62, %v757_v13 }
 0x3bd   : > { %794 = vperm.xlu0 %2171, %v2186_v59  }
 0x3d8   : > { %769 = vadd.xlane.f32.xlu1 %v768_v60 }
 0x3dc   : > { %772 = vadd.xlane.f32.xlu1 %v771_v61 }
 0x3ed   : > { %804 = vperm.xlu1 %2172, %v2188_v62  }
 0x42c   : > { %v764_v2 = vpop.xlane.xlu1 %763 }
 0x42d   : > { %v774_v4 = vadd.f32 %v764_v2, %v758_v1 }
 0x42f   : > { %779 = vst.msk [vmem:[#allocation6] sm:$0xff] %vm778_vm8, %v774_v4 }
 0x430   : > { %v767_v6 = vpop.xlane.xlu0 %766  ;;  %v800_v8 = vpop.permute.xlu1 %799 }
 0x431   : > { %v775_v7 = vadd.f32 %v767_v6, %v759_v5  ;;  %v809_v32 = vmul.f32 %v800_v8, %v785_v25 }
 0x433   : > { %780 = vst.msk [vmem:[#allocation6 + $0x8] sm:$0xff] %vm778_vm8, %v775_v7 }
 0x438   : > { %v795_v17 = vpop.permute.xlu0 %794 }
 0x439   : > { %v808_v24 = vmul.f32 %v795_v17, %v784_v16 }
 0x461   : > { %v770_v12 = vpop.xlane.xlu1 %769 }
 0x462   : > { %v776_v14 = vadd.f32 %v770_v12, %v760_v11 }
 0x464   : > { %781 = vst.msk [vmem:[#allocation6 + $0x10] sm:$0xff] %vm778_vm8, %v776_v14  ;;  %v856_v18 = vpop.f32.mrf.mxu0 }
 0x465   : > { %v1000_v20 = vadd.f32 %v856_v18, %v807_v15  ;;  %v773_v21 = vpop.xlane.xlu1 %772 }
 0x466   : > { %v777_v22 = vadd.f32 %v773_v21, %v761_v19  ;;  %v1957_v23 = vpop.f32.mrf.mxu0 }
 0x467   : > { %1004 = vst.msk [vmem:[#allocation7] sm:$0xff] %vm490_vm5, %v1000_v20 }
 0x468   : > { %782 = vst.msk [vmem:[#allocation6 + $0x18] sm:$0xff] %vm778_vm8, %v777_v22  ;;  %v859_v27 = vpop.f32.mrf.mxu0  ;;  %v902_v28 = vpop.f32.mrf.mxu1 }
 0x469   : > { %v1001_v29 = vadd.f32 %v902_v28, %v808_v24  ;;  %v805_v33 = vpop.permute.xlu1 %804 }
 0x46a   : > { %v1958_v30 = vpop.f32.mrf.mxu0  ;;  %v1963_v31 = vpop.f32.mrf.mxu1  ;;  %v810_v40 = vmul.f32 %v805_v33, %v786_v34 }
 0x46b   : > { %1005 = vst.msk [vmem:[#allocation7 + $0x8] sm:$0xff] %vm490_vm5, %v1001_v29 }
 0x46c   : > { %v905_v35 = vpop.f32.mrf.mxu1  ;;  %v948_v36 = vpop.f32.mrf.mxu0 }
 0x46d   : > { %v1002_v37 = vadd.f32 %v948_v36, %v809_v32 }
 0x46e   : > { %v1964_v38 = vpop.f32.mrf.mxu1  ;;  %v1969_v39 = vpop.f32.mrf.mxu0 }
 0x46f   : > { %1006 = vst.msk [vmem:[#allocation7 + $0x10] sm:$0xff] %vm490_vm5, %v1002_v37 }
 0x470   : > { %v951_v41 = vpop.f32.mrf.mxu0  ;;  %v994_v42 = vpop.f32.mrf.mxu1 }
 0x471   : > { %v1003_v43 = vadd.f32 %v994_v42, %v810_v40 }
 0x472   : > { %v1970_v44 = vpop.f32.mrf.mxu0  ;;  %v1975_v45 = vpop.f32.mrf.mxu1 }
 0x473   : > { %1007 = vst.msk [vmem:[#allocation7 + $0x18] sm:$0xff] %vm490_vm5, %v1003_v43 }
 0x474   : > { %v997_v46 = vpop.f32.mrf.mxu1 }
 0x476   : > { %v1976_v47 = vpop.f32.mrf.mxu1 }
 0x477 PF: > { %p1854_p7 = scmp.gt.s32.totalorder %s463_s27, %s2645_s20 }
 0x478   : > { %s1024_s6 = sshra.s32 (!%p1854_p7), %s2648_s9, 3  ;;  %s1016_s19 = sshra.s32 (!%p1854_p7), %s2645_s20, 3 }
 0x479   : > { %1015 = sbr.rel (%p1854_p7) target bundleno = 1849 (0x739), region = 68  ;;  %s2788_s24 = sshll.u32 (!%p1854_p7), %s1024_s6, 2 }
 0x47a   : > { %s1027_s27 = scalar_lea.vmem (!%p1854_p7), [#allocation3], %s2788_s24  ;;  %s1855_s20 = sshll.u32 (!%p1854_p7), %s1016_s19, 2 }
 0x47b   : > { %s1019_s9 = scalar_lea.vmem (!%p1854_p7), [#allocation2], %s1855_s20  ;;  %s1033_s25 = scalar_lea.vmem (!%p1854_p7), [#allocation4], %s2788_s24 }
 0x47e   : > { %v2432_v48 = vmov 0.0   ;;  %vm1038_vm10 = vcmask 64512   ;;  %vm2433_vm11 = vmmov 0   ;;  %v1028_v50 = vld [vmem:[%s1027_s27] sm:$0xf]  ;;  %v2434_v14 = vmov 0  }
 0x47f   : > { %1977 = vmatprep.subr.bf16.mxu0 %v2432_v48  ;;  %1983 = vmatprep.subr.bf16.mxu1 %v2432_v48  ;;  %v1029_v49 = vld [vmem:[%s1027_s27 + $0x4] sm:$0xf]  ;;  %v1043_v51 = vsel %vm1038_vm10, %v1028_v50, 0  ;;  %v1030_v53 = vld [vmem:[%s1027_s27 + $0x8] sm:$0xf]  ;;  %v1223_v17 = vld [vmem:[#allocation5] sm:$0xff] }
 0x480   : > { %1979 = vmatprep.mubr.msk.bf16.mxu0 %vm2433_vm11, %v2432_v48  ;;  %1985 = vmatprep.mubr.msk.bf16.mxu1 %vm2433_vm11, %v2432_v48  ;;  %v1089_v52 = vsel %vm1038_vm10, %v1029_v49, 0  ;;  %v1031_v54 = vld [vmem:[%s1027_s27 + $0xc] sm:$0xf]  ;;  %v1020_v55 = vld [vmem:[%s1019_s9] sm:$0xf]  ;;  %v1135_v57 = vsel %vm1038_vm10, %v1030_v53, 0 }
 0x481   : > { %1978 = vmatpush3.bf16.xpose.msra.mxu0 %v1043_v51  ;;  %1984 = vmatpush3.bf16.xpose.msra.mxu1 %v1089_v52  ;;  %v1021_v56 = vld [vmem:[%s1019_s9 + $0x4] sm:$0xf]  ;;  %v1181_v58 = vsel %vm1038_vm10, %v1031_v54, 0  ;;  %v1022_v59 = vld [vmem:[%s1019_s9 + $0x8] sm:$0xf]  ;;  %vm1311_vm12 = vcmask 7168  }
 0x482   : > { %1989 = vmatprep.subr.bf16.mxu0 %v2432_v48  ;;  %1995 = vmatprep.subr.bf16.mxu1 %v2432_v48  ;;  %v1023_v60 = vld [vmem:[%s1019_s9 + $0xc] sm:$0xf]  ;;  %v2831_v20 = vld [vmem:[#allocation5 + $0x8] sm:$0xff]  ;;  %v1225_v25 = vld [vmem:[#allocation5 + $0x10] sm:$0xff]  ;;  %vm1351_vm13 = vcmask 1043456  }
 0x483   : > { %2189 = vset.pattern.permute.xlu0 %v2434_v14  ;;  %2190 = vset.pattern.permute.xlu1 %v2434_v14  ;;  %v2842_v30 = vld [vmem:[#allocation5 + $0x18] sm:$0xff]  ;;  %v1034_v34 = vld [vmem:[%s1033_s25] sm:$0xf]  ;;  %v1035_v37 = vld [vmem:[%s1033_s25 + $0x4] sm:$0xf] }
 0x484   : > { %v1353_v36 = vsel %vm1351_vm13, %v1034_v34, 0  ;;  %v1399_v38 = vsel %vm1351_vm13, %v1035_v37, 0  ;;  %v1036_v40 = vld [vmem:[%s1033_s25 + $0x8] sm:$0xf]  ;;  %v1037_v42 = vld [vmem:[%s1033_s25 + $0xc] sm:$0xf] }
 0x485   : > { %v1445_v41 = vsel %vm1351_vm13, %v1036_v40, 0  ;;  %v1491_v43 = vsel %vm1351_vm13, %v1037_v42, 0 }
 0x488   : > { %1980 = vmatmul.mubr.msk.bf16.vlgmr.msra.gmra.mxu0 %vm1038_vm10, %v1020_v55  ;;  %1986 = vmatmul.mubr.msk.bf16.vlgmr.msra.gmra.mxu1 %vm1038_vm10, %v1021_v56 }
 0x489   : > { %1990 = vmatpush3.bf16.xpose.msra.mxu0 %v1135_v57  ;;  %1996 = vmatpush3.bf16.xpose.msra.mxu1 %v1181_v58 }
 0x48a   : > { %1991 = vmatprep.mubr.msk.bf16.mxu0 %vm2433_vm11, %v2432_v48  ;;  %1997 = vmatprep.mubr.msk.bf16.mxu1 %vm2433_vm11, %v2432_v48 }
 0x48b   : > { %2001 = vmatprep.subr.bf16.mxu0 %v2432_v48  ;;  %2007 = vmatprep.subr.bf16.mxu1 %v2432_v48 }
 0x490   : > { %1992 = vmatmul.mubr.msk.bf16.vlgmr.msra.gmra.mxu0 %vm1038_vm10, %v1022_v59  ;;  %1998 = vmatmul.mubr.msk.bf16.vlgmr.msra.gmra.mxu1 %vm1038_vm10, %v1023_v60 }
 0x491   : > { %2003 = vmatprep.mubr.msk.bf16.mxu0 %vm2433_vm11, %v2432_v48  ;;  %2009 = vmatprep.mubr.msk.bf16.mxu1 %vm2433_vm11, %v2432_v48 }
 0x492   : > { %2002 = vmatpush3.bf16.msra.mxu0 %v1353_v36  ;;  %2008 = vmatpush3.bf16.msra.mxu1 %v1399_v38  ;;  %v1318_v36 = vld [vmem:[#allocation7 + $0x10] sm:$0xff] }
 0x493   : > { %2013 = vmatprep.subr.bf16.mxu0 %v2432_v48  ;;  %2019 = vmatprep.subr.bf16.mxu1 %v2432_v48 }
 0x548   : > { %v2815_v26 = vpop.f32.mrf.mxu0  ;;  %v2817_v61 = vpop.f32.mrf.mxu1 }
 0x549   : > { %v1227_v62 = vsel %vm1038_vm10, %v2815_v26, -inf  ;;  %v1230_v1 = vsel %vm1038_vm10, %v2817_v61, -inf }
 0x54a   : > { %v1987_v63 = vpop.f32.mrf.mxu1  ;;  %1228 = vmax.xlane.f32.xlu0 %v1227_v62  ;;  %v1981_v0 = vpop.f32.mrf.mxu0 }
 0x54c   : > { %v1082_v2 = vpop.f32.mrf.mxu0  ;;  %v1128_v3 = vpop.f32.mrf.mxu1 }
 0x54e   : > { %v1988_v4 = vpop.f32.mrf.mxu1  ;;  %1231 = vmax.xlane.f32.xlu0 %v1230_v1  ;;  %v1982_v5 = vpop.f32.mrf.mxu0 }
 0x550   : > { %v2823_v6 = vpop.f32.mrf.mxu0  ;;  %v2825_v7 = vpop.f32.mrf.mxu1 }
 0x551   : > { %v1233_v8 = vsel %vm1038_vm10, %v2823_v6, -inf  ;;  %v1236_v11 = vsel %vm1038_vm10, %v2825_v7, -inf }
 0x552   : > { %v1999_v9 = vpop.f32.mrf.mxu1  ;;  %1234 = vmax.xlane.f32.xlu1 %v1233_v8  ;;  %v1993_v10 = vpop.f32.mrf.mxu0 }
 0x553   : > { %v1287_v10 = vld [vmem:[#allocation6] sm:$0xff] }
 0x554   : > { %v1174_v12 = vpop.f32.mrf.mxu0  ;;  %v1220_v13 = vpop.f32.mrf.mxu1 }
 0x555   : > { %v1288_v13 = vld [vmem:[#allocation6 + $0x8] sm:$0xff] }
 0x556   : > { %v2000_v15 = vpop.f32.mrf.mxu1  ;;  %1237 = vmax.xlane.f32.xlu1 %v1236_v11  ;;  %v1994_v16 = vpop.f32.mrf.mxu0 }
 0x5d3   : > { %v1229_v18 = vpop.xlane.xlu0 %1228 }
 0x5d4   : > { %v1239_v19 = vmax.f32 %v1223_v17, %v1229_v18 }
 0x5d6   : > { %v1243_v21 = vsub.f32 %v1223_v17, %v1239_v19  ;;  %1541 = vst.msk [vmem:[#allocation5] sm:$0xff] %vm1311_vm12, %v1239_v19  ;;  %1257 = vperm.xlu0 %2189, %v1239_v19   ;;  %v1289_v19 = vld [vmem:[#allocation6 + $0x10] sm:$0xff] }
 0x5d7   : > { %v1232_v22 = vpop.xlane.xlu0 %1231 }
 0x5d8   : > { %v1247_v23 = vmul.f32 1.442695, %v1243_v21  ;;  %v2835_v24 = vmax.f32 %v2831_v20, %v1232_v22 }
 0x5da   : > { %2191 = vpow2.f32 %v1247_v23  ;;  %v1244_v27 = vsub.f32 %v2831_v20, %v2835_v24  ;;  %1542 = vst.msk [vmem:[#allocation5 + $0x8] sm:$0xff] %vm1311_vm12, %v2835_v24  ;;  %1262 = vperm.xlu1 %2190, %v2835_v24   ;;  %v1316_v20 = vld [vmem:[#allocation7] sm:$0xff]  ;;  %v1290_v23 = vld [vmem:[#allocation6 + $0x18] sm:$0xff] }
 0x5db   : > { %v1235_v28 = vpop.xlane.xlu1 %1234 }
 0x5dc   : > { %v1241_v29 = vmax.f32 %v1225_v25, %v1235_v28  ;;  %v1249_v1 = vmul.f32 1.442695, %v1244_v27  ;;  %v1317_v27 = vld [vmem:[#allocation7 + $0x8] sm:$0xff] }
 0x5de   : > { %v1245_v31 = vsub.f32 %v1225_v25, %v1241_v29  ;;  %1543 = vst.msk [vmem:[#allocation5 + $0x10] sm:$0xff] %vm1311_vm12, %v1241_v29  ;;  %1267 = vperm.xlu1 %2190, %v1241_v29  }
 0x5df   : > { %v1238_v32 = vpop.xlane.xlu1 %1237 }
 0x5e0   : > { %v2846_v33 = vmax.f32 %v2842_v30, %v1238_v32  ;;  %v1251_v58 = vmul.f32 1.442695, %v1245_v31 }
 0x5e2   : > { %v1246_v35 = vsub.f32 %v2842_v30, %v2846_v33  ;;  %1544 = vst.msk [vmem:[#allocation5 + $0x18] sm:$0xff] %vm1311_vm12, %v2846_v33  ;;  %1272 = vperm.xlu1 %2190, %v2846_v33  }
 0x5e7   : > { %v2192_v39 = vpop.eup %2191 }
 0x5e8   : > { %1322 = vperm.xlu1 %2190, %v2192_v39   ;;  %v1291_v11 = vmul.f32 %v2192_v39, %v1287_v10 }
 0x651   : > { %v1258_v44 = vpop.permute.xlu0 %1257 }
 0x652   : > { %v1275_v45 = vsub.f32 %v2815_v26, %v1258_v44  ;;  %v1319_v44 = vld [vmem:[#allocation7 + $0x18] sm:$0xff] }
 0x654   : > { %v1279_v46 = vmul.f32 1.442695, %v1275_v45 }
 0x655   : > { %v1263_v47 = vpop.permute.xlu1 %1262 }
 0x656   : > { %2193 = vpow2.f32 %v1279_v46  ;;  %v1276_v50 = vsub.f32 %v2817_v61, %v1263_v47 }
 0x658   : > { %v1281_v49 = vmul.f32 1.442695, %v1276_v50 }
 0x659   : > { %v1268_v51 = vpop.permute.xlu1 %1267 }
 0x65a   : > { %2195 = vpow2.f32 %v1281_v49  ;;  %v1277_v52 = vsub.f32 %v2823_v6, %v1268_v51 }
 0x65c   : > { %v1283_v53 = vmul.f32 1.442695, %v1277_v52 }
 0x65d   : > { %v1273_v54 = vpop.permute.xlu1 %1272 }
 0x65e   : > { %2197 = vpow2.f32 %v1283_v53  ;;  %v1278_v55 = vsub.f32 %v2825_v7, %v1273_v54 }
 0x660   : > { %v1285_v56 = vmul.f32 1.442695, %v1278_v55 }
 0x662   : > { %2199 = vpow2.f32 %v1285_v56 }
 0x663   : > { %v2194_v57 = vpop.eup %2193  ;;  %2201 = vpow2.f32 %v1251_v58  ;;  %v1323_v9 = vpop.permute.xlu1 %1322 }
 0x664   : > { %v1295_v59 = vsel %vm1038_vm10, %v2194_v57, 0.0  ;;  %v1344_v60 = vpack.c.bf16 %v2194_v57, %v2194_v57  ;;  %2203 = vpow2.f32 %v1249_v1  ;;  %v1340_v25 = vmul.f32 %v1323_v9, %v1316_v20 }
 0x665   : > { %1296 = vadd.xlane.f32.xlu1 %v1295_v59 }
 0x666   : > { %2004 = vmatmul.mubr.msk.bf16.vlgmr.msra.gmra.mxu0 %vm1038_vm10, %v1344_v60 }
 0x667   : > { %v2196_v26 = vpop.eup %2195  ;;  %2014 = vmatpush3.bf16.msra.mxu0 %v1445_v41  ;;  %2015 = vmatprep.mubr.msk.bf16.mxu0 %vm2433_vm11, %v2432_v48 }
 0x668   : > { %v1298_v61 = vsel %vm1038_vm10, %v2196_v26, 0.0  ;;  %v1345_v62 = vpack.c.bf16 %v2196_v26, %v2196_v26 }
 0x669   : > { %1299 = vadd.xlane.f32.xlu0 %v1298_v61 }
 0x66a   : > { %2010 = vmatmul.mubr.msk.bf16.vlgmr.msra.gmra.mxu1 %vm1038_vm10, %v1345_v62 }
 0x66b   : > { %v2198_v63 = vpop.eup %2197  ;;  %2020 = vmatpush3.bf16.msra.mxu1 %v1491_v43  ;;  %2021 = vmatprep.mubr.msk.bf16.mxu1 %vm2433_vm11, %v2432_v48  ;;  %v1253_v48 = vmul.f32 1.442695, %v1246_v35 }
 0x66c   : > { %v1346_v0 = vpack.c.bf16 %v2198_v63, %v2198_v63  ;;  %v1301_v6 = vsel %vm1038_vm10, %v2198_v63, 0.0 }
 0x66d   : > { %2205 = vpow2.f32 %v1253_v48 }
 0x66e   : > { %2016 = vmatmul.mubr.msk.bf16.vlgmr.msra.gmra.mxu0 %vm1038_vm10, %v1346_v0 }
 0x66f   : > { %v2200_v2 = vpop.eup %2199 }
 0x670   : > { %v1347_v3 = vpack.c.bf16 %v2200_v2, %v2200_v2  ;;  %v2202_v4 = vpop.eup %2201  ;;  %v1304_v7 = vsel %vm1038_vm10, %v2200_v2, 0.0 }
 0x671   : > { %v2204_v5 = vpop.eup %2203  ;;  %v1293_v21 = vmul.f32 %v2202_v4, %v1289_v19 }
 0x672   : > { %2022 = vmatmul.mubr.msk.bf16.vlgmr.msra.gmra.mxu1 %vm1038_vm10, %v1347_v3  ;;  %v1292_v15 = vmul.f32 %v2204_v5, %v1288_v13 }
 0x676   : > { %1332 = vperm.xlu1 %2190, %v2202_v4  }
 0x67a   : > { %v2206_v8 = vpop.eup %2205 }
 0x67b   : > { %v1294_v30 = vmul.f32 %v2206_v8, %v1290_v23 }
 0x67f   : > { %1327 = vperm.xlu0 %2189, %v2204_v5  }
 0x69a   : > { %1302 = vadd.xlane.f32.xlu1 %v1301_v6 }
 0x69e   : > { %1305 = vadd.xlane.f32.xlu1 %v1304_v7 }
 0x6af   : > { %1337 = vperm.xlu1 %2190, %v2206_v8  }
 0x6ee   : > { %v1297_v12 = vpop.xlane.xlu1 %1296 }
 0x6ef   : > { %v1307_v14 = vadd.f32 %v1297_v12, %v1291_v11 }
 0x6f1   : > { %1312 = vst.msk [vmem:[#allocation6] sm:$0xff] %vm1311_vm12, %v1307_v14 }
 0x6f2   : > { %v1300_v16 = vpop.xlane.xlu0 %1299  ;;  %v1333_v18 = vpop.permute.xlu1 %1332 }
 0x6f3   : > { %v1308_v17 = vadd.f32 %v1300_v16, %v1292_v15  ;;  %v1342_v42 = vmul.f32 %v1333_v18, %v1318_v36 }
 0x6f5   : > { %1313 = vst.msk [vmem:[#allocation6 + $0x8] sm:$0xff] %vm1311_vm12, %v1308_v17 }
 0x6fa   : > { %v1328_v28 = vpop.permute.xlu0 %1327 }
 0x6fb   : > { %v1341_v35 = vmul.f32 %v1328_v28, %v1317_v27 }
 0x723   : > { %v1303_v22 = vpop.xlane.xlu1 %1302 }
 0x724   : > { %v1309_v24 = vadd.f32 %v1303_v22, %v1293_v21 }
 0x726   : > { %1314 = vst.msk [vmem:[#allocation6 + $0x10] sm:$0xff] %vm1311_vm12, %v1309_v24  ;;  %v1389_v29 = vpop.f32.mrf.mxu0 }
 0x727   : > { %v1533_v31 = vadd.f32 %v1389_v29, %v1340_v25  ;;  %v1306_v32 = vpop.xlane.xlu1 %1305 }
 0x728   : > { %v1310_v33 = vadd.f32 %v1306_v32, %v1294_v30  ;;  %v2005_v34 = vpop.f32.mrf.mxu0 }
 0x729   : > { %1537 = vst.msk [vmem:[#allocation7] sm:$0xff] %vm1038_vm10, %v1533_v31 }
 0x72a   : > { %1315 = vst.msk [vmem:[#allocation6 + $0x18] sm:$0xff] %vm1311_vm12, %v1310_v33  ;;  %v1392_v37 = vpop.f32.mrf.mxu0  ;;  %v1435_v38 = vpop.f32.mrf.mxu1 }
 0x72b   : > { %v1534_v39 = vadd.f32 %v1435_v38, %v1341_v35  ;;  %v1338_v43 = vpop.permute.xlu1 %1337 }
 0x72c   : > { %v2006_v40 = vpop.f32.mrf.mxu0  ;;  %v2011_v41 = vpop.f32.mrf.mxu1  ;;  %v1343_v51 = vmul.f32 %v1338_v43, %v1319_v44 }
 0x72d   : > { %1538 = vst.msk [vmem:[#allocation7 + $0x8] sm:$0xff] %vm1038_vm10, %v1534_v39 }
 0x72e   : > { %v1438_v45 = vpop.f32.mrf.mxu1  ;;  %v1481_v46 = vpop.f32.mrf.mxu0 }
 0x72f   : > { %v1535_v47 = vadd.f32 %v1481_v46, %v1342_v42 }
 0x730   : > { %v2012_v50 = vpop.f32.mrf.mxu1  ;;  %v2017_v49 = vpop.f32.mrf.mxu0 }
 0x731   : > { %1539 = vst.msk [vmem:[#allocation7 + $0x10] sm:$0xff] %vm1038_vm10, %v1535_v47 }
 0x732   : > { %v1484_v52 = vpop.f32.mrf.mxu0  ;;  %v1527_v53 = vpop.f32.mrf.mxu1 }
 0x733   : > { %v1536_v54 = vadd.f32 %v1527_v53, %v1343_v51 }
 0x734   : > { %v2018_v55 = vpop.f32.mrf.mxu0  ;;  %v2023_v56 = vpop.f32.mrf.mxu1 }
 0x735   : > { %1540 = vst.msk [vmem:[#allocation7 + $0x18] sm:$0xff] %vm1038_vm10, %v1536_v54 }
 0x736   : > { %v1530_v57 = vpop.f32.mrf.mxu1 }
 0x738   : > { %v2024_v58 = vpop.f32.mrf.mxu1 }
 0x739 PF: > { %s1545_s28 = sld [smem:[#allocation12]] }
 0x73f   : > { %p1866_p9 = scmp.ne.s32.totalorder %s1545_s28, 1 }
 0x740   : > { %s2438_s0 = smov (!%p1866_p9), 8   ;;  %s2439_s26 = smov (!%p1866_p9), 16  }
 0x741   : > { %1549 = sbr.rel (%p1866_p9) target bundleno = 2332 (0x91c), region = 72  ;;  %s2440_s10 = smov (!%p1866_p9), 24  }
 0x746   : > { %v1551_v59 = vld [vmem:[#allocation6 + $0x8] sm:$0xff]  ;;  %v1553_v60 = vld [vmem:[#allocation6 + $0x18] sm:$0xff]  ;;  %v1552_v26 = vld [vmem:[#allocation6 + $0x10] sm:$0xff]  ;;  %v2435_v61 = vmov 0   ;;  %v2436_v4 = vmov 0.0   ;;  %vm2437_vm14 = vmmov 0  }
 0x747   : > { %2207 = vset.pattern.permute.xlu0 %v2435_v61  ;;  %2208 = vset.pattern.permute.xlu1 %v2435_v61  ;;  %2211 = vrcp.f32 %v1551_v59  ;;  %v1550_v62 = vld [vmem:[#allocation6] sm:$0xff]  ;;  %v1559_v5 = vld [vmem:[#allocation7 + $0x8] sm:$0xff]  ;;  %v1561_v48 = vld [vmem:[#allocation7 + $0x18] sm:$0xff]  ;;  %vm1596_vm15 = vcmask 126016   ;;  %vm1605_vm0 = vcmask 191616   ;;  %vm1614_vm3 = vcmask 257216  }
 0x748   : > { %2213 = vrcp.f32 %v1553_v60  ;;  %v2209_v3 = vld [vmem:[#allocation18 + $0x8] sm:$0xff]   ;;  %2025 = vmatprep.subr.bf16.mxu0 %v2436_v4  ;;  %v2210_v6 = vld [vmem:[#allocation18] sm:$0xff]   ;;  %2029 = vmatprep.mubr.msk.bf16.mxu0 %vm2437_vm14, %v2436_v4  ;;  %v1560_v11 = vld [vmem:[#allocation7 + $0x10] sm:$0xff] }
 0x749   : > { %2215 = vrcp.f32 %v1552_v26  ;;  %2026 = vmatpush3.bf16.msra.mxu0 %v2209_v3  ;;  %v1558_v13 = vld [vmem:[#allocation7] sm:$0xff]  ;;  %v1870_v25 = vld [vmem:[%s2954_s7] ss:$0 sm:$0xff] }
 0x74a   : > { %2217 = vrcp.f32 %v1550_v62  ;;  %2027 = vmatprep.subr.bf16.mxu0 %v2436_v4 }
 0x74d   : > { %2028 = vmatpush3.bf16.msra.mxu0 %v2210_v6 }
 0x754   : > { %v2212_v63 = vpop.eup %2211 }
 0x755   : > { %v2214_v0 = vpop.eup %2213  ;;  %1569 = vperm.xlu0 %2207, %v2212_v63  }
 0x756   : > { %v2216_v1 = vpop.eup %2215  ;;  %1579 = vperm.xlu1 %2208, %v2214_v0  }
 0x757   : > { %v2218_v2 = vpop.eup %2217 }
 0x759   : > { %1574 = vperm.xlu0 %2207, %v2216_v1  }
 0x75a   : > { %1564 = vperm.xlu1 %2208, %v2218_v2  }
 0x7d0   : > { %v1570_v7 = vpop.permute.xlu0 %1569 }
 0x7d1   : > { %v1583_v8 = vmul.f32 %v1570_v7, %v1559_v5  ;;  %v1580_v9 = vpop.permute.xlu1 %1579 }
 0x7d2   : > { %v1585_v10 = vmul.f32 %v1580_v9, %v1561_v48 }
 0x7d3   : > { %v1880_v12 = vpack.c.bf16 %v1583_v8, %v1583_v8 }
 0x7d4   : > { %v1575_v14 = vpop.permute.xlu0 %1574  ;;  %v1882_v15 = vpack.c.bf16 %v1585_v10, %v1585_v10 }
 0x7d5   : > { %v1584_v16 = vmul.f32 %v1575_v14, %v1560_v11  ;;  %1593 = vrot.lane.b32.xlu0 %v1880_v12, %s2438_s0  ;;  %v1565_v17 = vpop.permute.xlu1 %1564 }
 0x7d6   : > { %v1582_v18 = vmul.f32 %v1565_v17, %v1558_v13 }
 0x7d7   : > { %v1881_v19 = vpack.c.bf16 %v1584_v16, %v1584_v16 }
 0x7d8   : > { %v1586_v20 = vpack.c.bf16 %v1582_v18, %v1582_v18 }
 0x7d9   : > { %1602 = vrot.lane.b32.xlu1 %v1881_v19, %s2439_s26  ;;  %1611 = vrot.lane.b32.xlu0 %v1882_v15, %s2440_s10 }
 0x7da   : > { %1588 = vst.msk [vmem:[#allocation8] sm:$0xf] %vm371_vm2, %v1586_v20 }
 0x847   : > { %v1594_v21 = vpop.permute.xlu0 %1593 }
 0x848   : > { %1597 = vst.msk [vmem:[#allocation8] sm:$0xf] %vm1596_vm15, %v1594_v21 }
 0x84b   : > { %v1603_v22 = vpop.permute.xlu1 %1602  ;;  %v1612_v23 = vpop.permute.xlu0 %1611 }
 0x84c   : > { %1606 = vst.msk [vmem:[#allocation8] sm:$0xf] %vm1605_vm0, %v1603_v22 }
 0x84d   : > { %1615 = vst.msk [vmem:[#allocation8] sm:$0xf] %vm1614_vm3, %v1612_v23 }
 0x854   : > { %v1616_v24 = vld [vmem:[#allocation8] sm:$0xf] }
 0x855   : > { %2030 = vmatmul.mubr.msk.bf16.vlgmr.msra.gmra.mxu0 %vm325_vm1, %v1616_v24 }
 0x915   : > { %v1678_v27 = vpop.f32.mrf.mxu0 }
 0x916   : > { %v1679_v28 = vadd.f32 %v1870_v25, %v1678_v27 }
 0x917   : > { %v2031_v29 = vpop.f32.mrf.mxu0 }
 0x918   : > { %1684 = vst.msk [vmem:[%s290_s29] sm:$0xff] %vm325_vm1, %v1679_v28 }
 0x919   : > { %v1681_v30 = vpop.f32.mrf.mxu0 }
 0x91b   : > { %v2032_v31 = vpop.f32.mrf.mxu0 }
 0x91c PF: > { %s1693_s6 = sld [smem:[#allocation10]]  ;;  %s1701_s19 = sshll.u32 %s290_s29, 4  ;;  %s1702_s19 = int_to_ptr.vmem [resolvable:$true] %s1701_s19 }
 0x91d   : > { %s1686_s28 = scalar_lea.sflag [#allocation15], %s288_s4  ;;  %s2299_s0 = scalar_lea.vmem %s1702_s19, 128 }
 0x91e   : > { %p2300_p0 = scmp.ne.s32.totalorder %s1702_s19, %s2299_s0  ;;  %p2976_p12 = scmp.ne.s32.totalorder %s2967_s21, 0 }
 0x91f   : > { %s2441_s26 = smov [#allocation19]  }
 0x920   : > { %p2301_p3 = pnand %p2300_p0, %p2976_p12  ;;  %s2303_s23 = sshll.u32 %s2441_s26, 4  ;;  %s2304_s23 = int_to_ptr.vmem [resolvable:$false] %s2303_s23 }
 0x921   : > { %s2305_s10 = scalar_lea.vmem %s2304_s23, 256  ;;  %p2306_p8 = scmp.lt.s32.totalorder %s1702_s19, %s2304_s23 }
 0x922   : > { %s1697_s24 = sadd.s32 %s2399_s15, %s1693_s6  ;;  %p2302_p5 = pneg %p2301_p3 }
 0x923   : > { %s1875_s27 = sshll.u32 %s1697_s24, 7  ;;  %p2307_p13 = scmp.lt.s32.totalorder %s2305_s10, %s2299_s0 }
 0x924   : > { %s1699_s25 = scalar_lea.hbm %s2955_s8, %s1875_s27 }
 0x925   : > { %p2308_p1 = por %p2307_p13, %p2306_p8 }
 0x927   : > { %p2309_p6 = pnand %p2308_p1, %p2302_p5 }
 0x929   : > { %2312 = shalt.err (!%p2309_p6)
}
 0x92a   : > { %s2313_s15 = scalar_lea.hbm %s1699_s25, 128  ;;  %s2317_s17 = scalar_lea.hbm %s2955_s8, 256 }
 0x92b   : > { %p2314_p10 = scmp.ne.s32.totalorder %s1699_s25, %s2313_s15  ;;  %p2318_p11 = scmp.lt.s32.totalorder %s1699_s25, %s2955_s8 }
 0x92c   : > { %p2319_p7 = scmp.lt.s32.totalorder %s2317_s17, %s2313_s15 }
 0x92d   : > { %p2315_p2 = pnand %p2314_p10, %p2976_p12 }
 0x92e   : > { %p2320_p9 = por %p2319_p7, %p2318_p11 }
 0x92f   : > { %p2316_p4 = pneg %p2315_p2 }
 0x931   : > { %p2321_p0 = pnand %p2320_p9, %p2316_p4 }
 0x933   : > { %2324 = shalt.err (!%p2321_p0)
}
 0x934   : > { %2043 = dma.vmem_to_hbm [thread:$0]  (%p2976_p12), %s1702_s19, 128, %s1699_s25, %s1686_s28  }
 0x935 PF: > { %s2977_s24 = sld [smem:[#allocation23_spill]]  ;;  %s1713_s27 = sand.u32 1, %s2375_s11  }
 0x936   : > { %p2978_p3 = scmp.ne.s32.totalorder %s2968_s22, 0  ;;  %s1714_s20 = scalar_lea.sflag [#allocation15], %s1713_s27 }
 0x93b   : > { %p2979_p5 = scmp.ge.s32.totalorder %s2977_s24, 2 }
 0x93d   : > { %p2057_p8 = pnand %p2979_p5, %p2978_p3 }
 0x93f   : > { %p2058_p13 = pneg %p2057_p8 }
 0x941   : > { %2370 = dma.done.wait (%p2058_p13), %s1714_s20, 128  }
 0x942   : > { %2372 = vsyncadd (%p2058_p13), %s1714_s20, 4294967168  ;;  %s28_s9 = sadd.s32 1, %s2977_s24   ;;  %s2980_s21 = sld [smem:[#allocation24_spill]] }
 0x943   : > { %p25_p1 = scmp.ge.s32.totalorder %s28_s9, 4   ;;  %s2981_s11 = smov %s2379_s12 }
 0x944   : > { %s2982_s12 = smov %s2383_s13  ;;  %s2983_s13 = smov %s2621_s16 }
 0x945   : > { %s2984_s0 = smov %s2391_s14  ;;  %s2985_s14 = smov %s2395_s1 }
 0x946   : > { %s2986_s1 = smov %s2611_s18  ;;  %s2987_s15 = smov %s2403_s2 }
 0x947   : > { %s2989_s16 = smov %s28_s9  ;;  %27 = sbr.rel (!%p25_p1) target bundleno = 15 (0xf), region = 128 }
 0x948   : > { %s2988_s2 = smov %s2980_s21 }
 0x94c   :  { %1719 = vsyncpa [#allocation14], 1 }
 0x94d   :  { %1721 = vsyncpa [#allocation14 + $0x1], 1 }
 0x94e   :  { %1722 = vsyncpa [#allocation17], 1 }
 0x94f   :  { %1723 = vsyncpa [#allocation15], 1 }
 0x950   :  { %1725 = vsyncpa [#allocation15 + $0x1], 1 }

</bundles_post_ra>
